<compile_context>
chip_gen: v5e
topology: v5e:2x2
jax: 0.10.0
libtpu: 0.0.40
codegen_flags: <defaults>
</compile_context>

<pallas_src>
import numpy as np
import jax
import jax.numpy as jnp
from jax.experimental import pallas as pl
from jax.experimental.pallas import tpu as pltpu

MAX_LEN = 2048            # stand-in for self.max_len (=16000 in the module)
WIN = 128                 # synthetic frontend frame size (hop == win) -> lane-dense frames
T = MAX_LEN // WIN        # 16 frames per file
D = 128                   # synthetic hidden dim (real HuBERT layer-9: 768) -> lane-dense feat
K = 128                   # synthetic number of kmeans clusters
EPS = 1e-5                # F.layer_norm default eps

# Files fused per grid step. FPB*T = 128 rows fully fills the v5e MXU and gives
# a 128-lane unit row; set FPB=16 (256 rows) to match the v6e/v7x 256-wide MXU
# tile, keeping grid length >= 2 on v7x so both TensorCores get work.
FILES_PER_BLOCK = 8
ROWS_PER_BLOCK = FILES_PER_BLOCK * T   # 128


# ---------------------------------------------------------------------------
# Fused kernel: per-file layer_norm -> feature projection -> kmeans argmin
# (FILES_PER_BLOCK files per grid step; weights / transposed centroids stay
#  resident in VMEM across the whole grid).
# ---------------------------------------------------------------------------
def _save_features_kernel(frames_ref, w_ref, b_ref, ct_ref, cn_ref,
                          feat_ref, unit_ref):
    # --- 1) per-file F.layer_norm(x, x.shape): normalize over ALL clip samples
    # Block is (FPB, T, WIN); per-file stats via chained lane/sublane reductions
    # (keepdims) rather than reshaping T into the lane axis (no relayout copy).
    x = frames_ref[...]                                        # (FPB, T, WIN) f32

    def _sum_tw(v):                                            # sum over (T, WIN) per file
        return jnp.sum(jnp.sum(v, axis=2, keepdims=True), axis=1, keepdims=True)

    inv_n = 1.0 / (T * WIN)
    mean = _sum_tw(x) * inv_n                                  # (FPB, 1, 1)
    xc = x - mean
    var = _sum_tw(xc * xc) * inv_n                             # two-pass variance (precision)
    x_norm = xc * jax.lax.rsqrt(var + EPS)                     # f32 elementwise (v5e-safe)

    # --- 2) feature extraction hot path ------------------------------------
    # TODO(synk): real HuBERT extract_features (conv frontend + 9 pretrained
    # transformer layers) has no self-contained Pallas equivalent; a single
    # linear projection stands in for it.
    rows = x_norm.reshape(ROWS_PER_BLOCK, WIN)                 # merge leading dims (tile-aligned)
    feat = jnp.dot(rows.astype(jnp.bfloat16), w_ref[...],      # (FPB*T, 128) x (128, 128) on MXU
                   preferred_element_type=jnp.float32) + b_ref[...]   # (ROWS, D) f32
    feat_ref[...] = feat.reshape(FILES_PER_BLOCK, T, D).astype(feat_ref.dtype)  # bf16 writeback

    # --- 3) kmeans.predict(feat): argmin_k ||f - c_k||^2 --------------------
    #   == argmin_k (||c_k||^2 - 2 f.c_k);  ||c||^2 precomputed, centroids
    # pre-transposed to (D, K) so no feat transpose is needed on the XLU.
    scores = jnp.dot(feat.astype(jnp.bfloat16), ct_ref[...],   # (ROWS, K) f32
                     preferred_element_type=jnp.float32)
    dist = cn_ref[...] - 2.0 * scores                          # (1,K) bcast - (ROWS,K)
    min_d = jnp.min(dist, axis=1, keepdims=True)               # (ROWS, 1)
    idx = jax.lax.broadcasted_iota(jnp.int32, dist.shape, 1)   # cluster ids along lanes
    sentinel = jnp.int32(2 ** 30)
    unit_col = jnp.min(jnp.where(dist == min_d, idx, sentinel),
                       axis=1, keepdims=True)                  # (ROWS, 1), first-min ties
    unit_ref[0] = unit_col.reshape(1, ROWS_PER_BLOCK)          # lane-dense (1,128) store


# ---------------------------------------------------------------------------
# Host-side glue: batched pad/crop (ans / x_wav branch of forward) + framing.
# ---------------------------------------------------------------------------
def save_features_forward(audio_clips, w_proj, b_proj, centroids):
    """Numeric part of SaveFeatures.forward for a batch of clips.

    audio_clips: list of (1, L) float32 waveforms (already 'loaded'/'resampled').
    Returns (teacher_feat, teacher_unit): (B, T, D) bfloat16, (B, T) int32.
    """
    B = len(audio_clips)
    nblk = max(1, pl.cdiv(B, FILES_PER_BLOCK))
    B_pad = nblk * FILES_PER_BLOCK

    # Single host-side pad/crop buffer and ONE host->device transfer (instead of
    # B per-file pad + concat launches). Zero padding is intentionally included
    # in the layer-norm statistics, matching the original padded `ans` buffer.
    # Extra B_pad - B rows are zero dummy files dropped after the kernel.
    buf = np.zeros((B_pad, MAX_LEN), np.float32)
    for i, a in enumerate(audio_clips):
        a = np.asarray(a, dtype=np.float32).reshape(-1)
        # TODO(synk): original uses a random crop offset (random.randint);
        # deterministic offset 0 used here.
        n = min(a.shape[0], MAX_LEN)
        buf[i, :n] = a[:n]
    frames = jnp.asarray(buf).reshape(B_pad, T, WIN)

    # Constants hoisted out of the kernel (computed once, reused every block):
    # bf16 copies for the MXU, pre-transposed centroids, centroid squared norms.
    w_bf = w_proj.astype(jnp.bfloat16)                               # (WIN, D)
    ct_bf = centroids.T.astype(jnp.bfloat16)                         # (D, K)
    cnorm = jnp.sum(centroids * centroids, axis=-1).reshape(1, K)    # (1, K) f32

    feat, unit = pl.pallas_call(
        _save_features_kernel,
        grid=(nblk,),
        in_specs=[
            pl.BlockSpec((FILES_PER_BLOCK, T, WIN), lambda b: (b, 0, 0)),  # per-block frames
            pl.BlockSpec((WIN, D), lambda b: (0, 0)),                      # w_proj (resident)
            pl.BlockSpec((1, D), lambda b: (0, 0)),                        # b_proj (resident)
            pl.BlockSpec((D, K), lambda b: (0, 0)),                        # centroids^T (resident)
            pl.BlockSpec((1, K), lambda b: (0, 0)),                        # ||c||^2 (resident)
        ],
        out_specs=(
            pl.BlockSpec((FILES_PER_BLOCK, T, D), lambda b: (b, 0, 0)),    # teacher_feat
            pl.BlockSpec((1, 1, ROWS_PER_BLOCK), lambda b: (b, 0, 0)),     # teacher_unit (lane-dense)
        ),
        out_shape=(
            jax.ShapeDtypeStruct((B_pad, T, D), jnp.bfloat16),
            jax.ShapeDtypeStruct((nblk, 1, ROWS_PER_BLOCK), jnp.int32),
        ),
        compiler_params=pltpu.CompilerParams(
            dimension_semantics=("parallel",)),                            # megacore on v7x
    )(frames, w_bf, b_proj, ct_bf, cnorm)

    teacher_feat = feat[:B]                                  # (B, T, D) bf16
    teacher_unit = unit.reshape(B_pad, T)[:B]                # (B, T) int32
    return teacher_feat, teacher_unit


if __name__ == "__main__":
    key = jax.random.PRNGKey(0)
    kc, kw, kb, kk = jax.random.split(key, 4)

    # Synthetic "audio clips": a mix of shorter-than-max_len (pad branch) and
    # longer-than-max_len (crop branch) waveforms.
    B = 10
    lengths = [1500, 3000, 2048, 777, 2500, 100, 2047, 2049, 1024, 4000]
    clip_keys = jax.random.split(kc, B)
    audio_clips = [jax.random.normal(clip_keys[i], (1, lengths[i]), jnp.float32)
                   for i in range(B)]

    # Deterministic synthetic parameters (projection stand-in + kmeans codebook).
    w_proj = jax.random.normal(kw, (WIN, D), jnp.float32) * 0.05
    b_proj = jax.random.normal(kb, (1, D), jnp.float32) * 0.01
    centroids = jax.random.normal(kk, (K, D), jnp.float32)

    feat, unit = save_features_forward(audio_clips, w_proj, b_proj, centroids)
    jax.block_until_ready((feat, unit))

    assert feat.shape == (B, T, D) and feat.dtype == jnp.bfloat16
    assert unit.shape == (B, T) and unit.dtype == jnp.int32
    assert bool(jnp.all(unit >= 0)) and bool(jnp.all(unit < K))
    print("KERNEL_OK")
</pallas_src>

<mosaic_0001>
module attributes {stable_mosaic.version = 11 : i64} {
  func.func @_save_features_kernel(%arg0: i32, %arg1: memref<8x16x128xf32, #tpu.memory_space<vmem>>, %arg2: memref<128x128xbf16, #tpu.memory_space<vmem>>, %arg3: memref<1x128xf32, #tpu.memory_space<vmem>>, %arg4: memref<128x128xbf16, #tpu.memory_space<vmem>>, %arg5: memref<1x128xf32, #tpu.memory_space<vmem>>, %arg6: memref<8x16x128xbf16, #tpu.memory_space<vmem>>, %arg7: memref<1x1x128xi32, #tpu.memory_space<vmem>>) attributes {dimension_semantics = [#tpu.dimension_semantics<parallel>], iteration_bounds = array<i64: 2>, scalar_prefetch = 0 : i64, scratch_operands = 0 : i64, tpu.core_type = #tpu.core_type<tc>, window_params = [{transform_indices = @transform_0, window_bounds = array<i64: 8, 16, 128>}, {pipeline_mode = #tpu.pipeline_mode<synchronous>, transform_indices = @transform_1, window_bounds = array<i64: 128, 128>}, {pipeline_mode = #tpu.pipeline_mode<synchronous>, transform_indices = @transform_2, window_bounds = array<i64: 1, 128>}, {pipeline_mode = #tpu.pipeline_mode<synchronous>, transform_indices = @transform_3, window_bounds = array<i64: 128, 128>}, {pipeline_mode = #tpu.pipeline_mode<synchronous>, transform_indices = @transform_4, window_bounds = array<i64: 1, 128>}, {transform_indices = @transform_5, window_bounds = array<i64: 8, 16, 128>}, {transform_indices = @transform_6, window_bounds = array<i64: 1, 1, 128>}]} {
    %c0 = arith.constant 0 : index
    %c0_0 = arith.constant 0 : index
    %c0_1 = arith.constant 0 : index
    %0 = vector.load %arg1[%c0, %c0_0, %c0_1] : memref<8x16x128xf32, #tpu.memory_space<vmem>>, vector<8x16x128xf32>
    %cst = arith.constant dense<0.000000e+00> : vector<8x16xf32>
    %1 = vector.multi_reduction <add>, %0, %cst [2] : vector<8x16x128xf32> to vector<8x16xf32>
    %2 = vector.shape_cast %1 : vector<8x16xf32> to vector<8x16x1xf32>
    %cst_2 = arith.constant dense<0.000000e+00> : vector<8x1xf32>
    %3 = vector.multi_reduction <add>, %2, %cst_2 [1] : vector<8x16x1xf32> to vector<8x1xf32>
    %4 = vector.shape_cast %3 : vector<8x1xf32> to vector<8x1x1xf32>
    %cst_3 = arith.constant 4.8828125E-4 : f32
    %5 = vector.broadcast %cst_3 : f32 to vector<8x1x1xf32>
    %6 = arith.mulf %4, %5 : vector<8x1x1xf32>
    %7 = vector.broadcast %6 : vector<8x1x1xf32> to vector<8x16x128xf32>
    %8 = arith.subf %0, %7 : vector<8x16x128xf32>
    %9 = arith.mulf %8, %8 : vector<8x16x128xf32>
    %cst_4 = arith.constant dense<0.000000e+00> : vector<8x16xf32>
    %10 = vector.multi_reduction <add>, %9, %cst_4 [2] : vector<8x16x128xf32> to vector<8x16xf32>
    %11 = vector.shape_cast %10 : vector<8x16xf32> to vector<8x16x1xf32>
    %cst_5 = arith.constant dense<0.000000e+00> : vector<8x1xf32>
    %12 = vector.multi_reduction <add>, %11, %cst_5 [1] : vector<8x16x1xf32> to vector<8x1xf32>
    %13 = vector.shape_cast %12 : vector<8x1xf32> to vector<8x1x1xf32>
    %cst_6 = arith.constant 4.8828125E-4 : f32
    %14 = vector.broadcast %cst_6 : f32 to vector<8x1x1xf32>
    %15 = arith.mulf %13, %14 : vector<8x1x1xf32>
    %cst_7 = arith.constant 9.99999974E-6 : f32
    %16 = vector.broadcast %cst_7 : f32 to vector<8x1x1xf32>
    %17 = arith.addf %15, %16 : vector<8x1x1xf32>
    %18 = math.rsqrt %17 : vector<8x1x1xf32>
    %19 = vector.broadcast %18 : vector<8x1x1xf32> to vector<8x16x128xf32>
    %20 = arith.mulf %8, %19 : vector<8x16x128xf32>
    %21 = vector.shape_cast %20 : vector<8x16x128xf32> to vector<128x128xf32>
    %22 = arith.truncf %21 : vector<128x128xf32> to vector<128x128xbf16>
    %c0_8 = arith.constant 0 : index
    %c0_9 = arith.constant 0 : index
    %23 = vector.load %arg2[%c0_8, %c0_9] : memref<128x128xbf16, #tpu.memory_space<vmem>>, vector<128x128xbf16>
    %cst_10 = arith.constant dense<0.000000e+00> : vector<128x128xf32>
    %24 = tpu.matmul %22, %23, %cst_10 {dimension_numbers = #tpu.dot_dimension_numbers<[1], [0], [0], [1], [0, 0, 1, 1], [], []>} : vector<128x128xbf16>, vector<128x128xbf16>, vector<128x128xf32> -> vector<128x128xf32>
    %c0_11 = arith.constant 0 : index
    %c0_12 = arith.constant 0 : index
    %25 = vector.load %arg3[%c0_11, %c0_12] : memref<1x128xf32, #tpu.memory_space<vmem>>, vector<1x128xf32>
    %26 = vector.broadcast %25 : vector<1x128xf32> to vector<128x128xf32>
    %27 = arith.addf %24, %26 : vector<128x128xf32>
    %28 = vector.shape_cast %27 : vector<128x128xf32> to vector<8x16x128xf32>
    %29 = arith.truncf %28 : vector<8x16x128xf32> to vector<8x16x128xbf16>
    %c0_13 = arith.constant 0 : index
    %c0_14 = arith.constant 0 : index
    %c0_15 = arith.constant 0 : index
    %30 = vector.load %arg6[%c0_13, %c0_14, %c0_15] : memref<8x16x128xbf16, #tpu.memory_space<vmem>>, vector<8x16x128xbf16>
    tpu.vector_store %arg6[%c0_13, %c0_14, %c0_15], %29 {strides = array<i32>} : memref<8x16x128xbf16, #tpu.memory_space<vmem>>, vector<8x16x128xbf16>,
    %31 = arith.truncf %27 : vector<128x128xf32> to vector<128x128xbf16>
    %c0_16 = arith.constant 0 : index
    %c0_17 = arith.constant 0 : index
    %32 = vector.load %arg4[%c0_16, %c0_17] : memref<128x128xbf16, #tpu.memory_space<vmem>>, vector<128x128xbf16>
    %cst_18 = arith.constant dense<0.000000e+00> : vector<128x128xf32>
    %33 = tpu.matmul %31, %32, %cst_18 {dimension_numbers = #tpu.dot_dimension_numbers<[1], [0], [0], [1], [0, 0, 1, 1], [], []>} : vector<128x128xbf16>, vector<128x128xbf16>, vector<128x128xf32> -> vector<128x128xf32>
    %c0_19 = arith.constant 0 : index
    %c0_20 = arith.constant 0 : index
    %34 = vector.load %arg5[%c0_19, %c0_20] : memref<1x128xf32, #tpu.memory_space<vmem>>, vector<1x128xf32>
    %cst_21 = arith.constant 2.000000e+00 : f32
    %35 = vector.broadcast %cst_21 : f32 to vector<128x128xf32>
    %36 = arith.mulf %35, %33 : vector<128x128xf32>
    %37 = vector.broadcast %34 : vector<1x128xf32> to vector<128x128xf32>
    %38 = arith.subf %37, %36 : vector<128x128xf32>
    %cst_22 = arith.constant dense<0x7F800000> : vector<128xf32>
    %39 = vector.multi_reduction <minimumf>, %38, %cst_22 [1] : vector<128x128xf32> to vector<128xf32>
    %40 = vector.shape_cast %39 : vector<128xf32> to vector<128x1xf32>
    %41 = tpu.iota {dimensions = array<i32: 1>} : vector<128x128xi32>
    %42 = vector.broadcast %40 : vector<128x1xf32> to vector<128x128xf32>
    %43 = arith.cmpf oeq, %38, %42 : vector<128x128xf32>
    %c1073741824_i32 = arith.constant 1073741824 : i32
    %44 = vector.broadcast %c1073741824_i32 : i32 to vector<128x128xi32>
    %45 = arith.select %43, %41, %44 : vector<128x128xi1>, vector<128x128xi32>
    %cst_23 = arith.constant dense<2147483647> : vector<128xi32>
    %46 = vector.multi_reduction <minsi>, %45, %cst_23 [1] : vector<128x128xi32> to vector<128xi32>
    %47 = vector.shape_cast %46 : vector<128xi32> to vector<128x1xi32>
    %48 = vector.shape_cast %47 : vector<128x1xi32> to vector<1x128xi32>
    %c0_24 = arith.constant 0 : index
    %c0_25 = arith.constant 0 : index
    %c0_26 = arith.constant 0 : index
    %49 = vector.load %arg7[%c0_24, %c0_25, %c0_26] : memref<1x1x128xi32, #tpu.memory_space<vmem>>, vector<1x1x128xi32>
    %50 = vector.shape_cast %49 : vector<1x1x128xi32> to vector<1x128xi32>
    %51 = vector.shape_cast %48 : vector<1x128xi32> to vector<1x1x128xi32>
    tpu.vector_store %arg7[%c0_24, %c0_25, %c0_26], %51 {strides = array<i32>} : memref<1x1x128xi32, #tpu.memory_space<vmem>>, vector<1x1x128xi32>,
    return
  }
  func.func @transform_0(%arg0: i32) -> (i32, i32, i32) {
    %c0_i32 = arith.constant 0 : i32
    %c0_i32_0 = arith.constant 0 : i32
    %c0_i32_1 = arith.constant 0 : i32
    return %arg0, %c0_i32, %c0_i32_0 : i32, i32, i32
  }
  func.func @transform_1(%arg0: i32) -> (i32, i32) {
    %c0_i32 = arith.constant 0 : i32
    %c0_i32_0 = arith.constant 0 : i32
    %c0_i32_1 = arith.constant 0 : i32
    return %c0_i32, %c0_i32_0 : i32, i32
  }
  func.func @transform_2(%arg0: i32) -> (i32, i32) {
    %c0_i32 = arith.constant 0 : i32
    %c0_i32_0 = arith.constant 0 : i32
    %c0_i32_1 = arith.constant 0 : i32
    return %c0_i32, %c0_i32_0 : i32, i32
  }
  func.func @transform_3(%arg0: i32) -> (i32, i32) {
    %c0_i32 = arith.constant 0 : i32
    %c0_i32_0 = arith.constant 0 : i32
    %c0_i32_1 = arith.constant 0 : i32
    return %c0_i32, %c0_i32_0 : i32, i32
  }
  func.func @transform_4(%arg0: i32) -> (i32, i32) {
    %c0_i32 = arith.constant 0 : i32
    %c0_i32_0 = arith.constant 0 : i32
    %c0_i32_1 = arith.constant 0 : i32
    return %c0_i32, %c0_i32_0 : i32, i32
  }
  func.func @transform_5(%arg0: i32) -> (i32, i32, i32) {
    %c0_i32 = arith.constant 0 : i32
    %c0_i32_0 = arith.constant 0 : i32
    %c0_i32_1 = arith.constant 0 : i32
    return %arg0, %c0_i32, %c0_i32_0 : i32, i32, i32
  }
  func.func @transform_6(%arg0: i32) -> (i32, i32, i32) {
    %c0_i32 = arith.constant 0 : i32
    %c0_i32_0 = arith.constant 0 : i32
    %c0_i32_1 = arith.constant 0 : i32
    return %arg0, %c0_i32, %c0_i32_0 : i32, i32, i32
  }
}

</mosaic_0001>

<bundles_post_ra>
// kernel: tpu_custom_call.1
= control target key start
LH: loop header
LB: loop body
LE: loop exit
PB: predicated region body
PF: predicated region fallthrough
CT: control target
= control target key end

     0   :  { %12 = vsyncpa [#allocation3], 0  ;;  %s2652_s0 = inlined_call_operand.hbm [shape: f32[16,16,128], index: 0, kind: input, shape index: {}]   ;;  %s2653_s1 = inlined_call_operand.hbm [shape: bf16[128,128], index: 1, kind: input, shape index: {}]   ;;  %s2654_s2 = inlined_call_operand.vmem [shape: f32[1,128], index: 2, kind: input, shape index: {}]   ;;  %s2655_s3 = inlined_call_operand.hbm [shape: bf16[128,128], index: 3, kind: input, shape index: {}]   ;;  %s2656_s4 = inlined_call_operand.vmem [shape: f32[1,128], index: 4, kind: input, shape index: {}]   ;;  %s2657_s5 = inlined_call_operand.hbm [shape: bf16[16,16,128], index: 5, kind: output, shape index: {0}]   ;;  %s2658_s6 = inlined_call_operand.hbm [shape: s32[2,1,128], index: 6, kind: output, shape index: {1}]  }
   0x1   :  { %14 = vsyncpa [#allocation3 + $0x1], 0 }
   0x2   :  { %15 = vsyncpa [#allocation6], 0 }
   0x3   :  { %16 = vsyncpa [#allocation4], 0 }
   0x4   :  { %18 = vsyncpa [#allocation4 + $0x1], 0 }
   0x5   :  { %19 = vsyncpa [#allocation10], 0 }
   0x6   :  { %21 = vsyncpa [#allocation10 + $0x1], 0  ;;  %s1982_s21 = smov 0   ;;  %s1984_s22 = smov 0  }
   0x7   :  { %s1986_s23 = smov 0   ;;  %s1988_s24 = smov 0  }
   0x8 LB: > { %s2003_s25 = sadd.s32 4294967295, %s1937_s24   ;;  %s1482_s26 = sadd.s32 4294967294, %s1937_s24   ;;  %s1937_s24 = sphi %s1988_s24, %s2668_s24   ;;  %s1933_s23 = sphi %s1986_s23, %s2667_s23   ;;  %s1929_s22 = sphi %s1984_s22, %s2666_s22   ;;  %s1925_s21 = sphi %s1982_s21, %s2665_s21  }
   0x9   : > { %p47_p0 = scmp.ne.s32.totalorder %s1929_s22, %s1925_s21  ;;  %p48_p1 = scmp.eq.s32.totalorder %s2003_s25, 0 }
   0xa   : > { %p155_p2 = scmp.eq.s32.totalorder %s2003_s25, 1  ;;  %p161_p3 = scmp.eq.s32.totalorder %s1482_s26, 1 }
   0xb   : > { %p2012_p4 = por %p48_p1, %p47_p0  ;;  %p1483_p5 = scmp.ge.s32.totalorder %s1937_s24, 1 }
   0xc   : > { %p2017_p6 = por %p161_p3, %p47_p0  ;;  %p194_p7 = scmp.lt.s32.totalorder %s1937_s24, 3 }
   0xd   : > { %s205_s7 = sshll.u32 %s2653_s1, 4  ;;  %s1939_s9 = smov [#allocation5]   ;;  %s206_s7 = int_to_ptr.hbm [resolvable:$true] %s205_s7 }
   0xe   : > { %p2025_p8 = pnand %p1483_p5, %p194_p7  ;;  %s207_s10 = sshll.u32 %s1939_s9, 4  ;;  %s208_s10 = int_to_ptr.vmem [resolvable:$true] %s207_s10 }
   0xf   : > { %s222_s13 = sshll.u32 %s2655_s3, 4  ;;  %s1940_s14 = smov 64   ;;  %s223_s13 = int_to_ptr.hbm [resolvable:$true] %s222_s13 }
  0x10   : > { %p1663_p9 = pneg %p2025_p8  ;;  %s1941_s15 = smov 4  }
  0x11   : > { %s1942_s16 = smov [#allocation7]   ;;  %s2038_s18 = sadd.s32 1, %s1937_s24  }
  0x12   : > { %p1664_p10 = pnand %p1663_p9, %p48_p1  ;;  %s224_s17 = sshll.u32 %s1942_s16, 4  ;;  %s225_s17 = int_to_ptr.vmem [resolvable:$true] %s224_s17 }
  0x13   : > { %s34_s19 = sadd.s32 1, %s1933_s23  ;;  %s31_s20 = ssub.s32 %s1937_s24, %s2038_s18 }
  0x14   : > { %1666 = dma.hbm_to_vmem [thread:$0]  (!%p1664_p10), %s206_s7, 1024, %s208_s10, [#allocation6], %s1940_s14, %s1940_s14, %s1941_s15  }
  0x15   : > { %1669 = dma.hbm_to_vmem [thread:$0]  (!%p1664_p10), %s223_s13, 1024, %s225_s17, [#allocation6], %s1940_s14, %s1940_s14, %s1941_s15  }
  0x16   : > { %p41_p12 = scmp.ne.s32.totalorder %s1933_s23, %s1929_s22  ;;  %p32_p13 = scmp.eq.s32.totalorder %s31_s20, 0 }
  0x17   : > { %p42_p0 = scmp.eq.s32.totalorder %s1937_s24, 0  ;;  %p1683_p5 = scmp.lt.s32.totalorder %s1937_s24, 2 }
  0x18   : > { %p2048_p3 = por %p155_p2, %p41_p12  ;;  %s241_s30 = sand.u32 1, %s1933_s23  }
  0x19   : > { %s2054_s29 = scalar_select %p32_p13, %s1933_s23, %s34_s19  }
  0x1a   : > { %p43_p7 = por %p42_p0, %p41_p12  ;;  %s1487_s7 = sshll.u32 %s241_s30, 7 }
  0x1b   : > { %s1567_s9 = sshll.u32 %s1937_s24, 7  ;;  %s245_s13 = scalar_lea.vmem [#allocation2], %s1487_s7 }
  0x1c   : > { %s251_s12 = scalar_lea.hbm %s2652_s0, %s1567_s9  ;;  %s254_s14 = sshll.u32 %s245_s13, 4  ;;  %s255_s14 = int_to_ptr.vmem [resolvable:$true] %s254_s14 }
  0x1d   : > { %s252_s15 = sshll.u32 %s251_s12, 4  ;;  %p2061_p2 = pnand %p1683_p5, %p43_p7  ;;  %s253_s15 = int_to_ptr.hbm [resolvable:$true] %s252_s15 }
  0x1e   : > { %s242_s17 = scalar_lea.sflag [#allocation3], %s241_s30  ;;  %s1805_s19 = sshra.s32 %s253_s15, 4  ;;  %s1806_s19 = int_to_ptr.hbm [resolvable:$true] %s1805_s19 }
  0x1f   : > { %s1807_s20 = scalar_lea.hbm %s1806_s19, 128  ;;  %p1809_p10 = pneg %p2061_p2 }
  0x20   : > { %p1808_p9 = scmp.ne.s32.totalorder %s1806_s19, %s1807_s20  ;;  %s1812_s10 = scalar_lea.hbm %s2652_s0, 256 }
  0x21   : > { %p1813_p0 = scmp.lt.s32.totalorder %s1806_s19, %s2652_s0  ;;  %p1814_p5 = scmp.lt.s32.totalorder %s1812_s10, %s1807_s20 }
  0x22   : > { %p1810_p12 = pnand %p1809_p10, %p1808_p9 }
  0x23   : > { %p1815_p7 = por %p1814_p5, %p1813_p0 }
  0x24   : > { %p1811_p13 = pneg %p1810_p12 }
  0x26   : > { %p1816_p11 = pnand %p1815_p7, %p1811_p13 }
  0x28   : > { %1819 = shalt.err (!%p1816_p11)
}
  0x29   : > { %s1943_s30 = smov 128   ;;  %s1944_s13 = smov 8  }
  0x2a   : > { %1673 = dma.hbm_to_vmem [thread:$0]  (!%p2061_p2), %s253_s15, 2048, %s255_s14, %s242_s17, %s1943_s30, %s1943_s30, %s1944_s13  }
  0x2b   : > { %266 = sbr.rel (%p2025_p8) target bundleno = 1062 (0x426), region = 40  ;;  %s2078_s9 = sand.u32 (!%p2025_p8), 1, %s1929_s22  }
  0x2c   : > { %s1492_s7 = sshll.u32 (!%p2025_p8), %s2078_s9, 7  ;;  %s269_s19 = scalar_lea.sflag (!%p2025_p8), [#allocation3], %s2078_s9 }
  0x2d   : > { %s2082_s20 = scalar_lea.vmem (!%p2025_p8), [#allocation2], %s1492_s7 }
  0x30   : > { %1908 = dma.done.wait (%p2012_p4), %s269_s19, 2048  }
  0x31   : > { %1910 = vsyncadd (%p2012_p4), %s269_s19, 4294965248 }
  0x32   : > { %1912 = dma.done.wait (%p48_p1), [#allocation6], 2048  }
  0x33   : > { %1914 = vsyncadd (%p48_p1), [#allocation6], 4294965248  ;;  %v2093_v0 = vld [vmem:[%s2082_s20 + $0x40] sm:$0xff]  ;;  %v2099_v2 = vld [vmem:[%s2082_s20 + $0x50] sm:$0xff]  ;;  %s1495_s14 = sshll.u32 %s2078_s9, 6  ;;  %s1585_s11 = sshll.u32 %s2003_s25, 6 }
  0x34   : > { %v2096_v1 = vld [vmem:[%s2082_s20] sm:$0xff]  ;;  %350 = vadd.xlane.f32.xlu0 %v2093_v0  ;;  %354 = vadd.xlane.f32.xlu2 %v2099_v2  ;;  %v2105_v3 = vld [vmem:[%s2082_s20 + $0x48] sm:$0xff]  ;;  %v2111_v5 = vld [vmem:[%s2082_s20 + $0x58] sm:$0xff]  ;;  %s2287_s15 = scalar_lea.vmem [#allocation8], %s1495_s14  ;;  %s1345_s13 = scalar_lea.hbm %s2657_s5, %s1585_s11 }
  0x35   : > { %334 = vadd.xlane.f32.xlu1 %v2096_v1  ;;  %v2108_v4 = vld [vmem:[%s2082_s20 + $0x8] sm:$0xff]  ;;  %v2117_v6 = vld [vmem:[%s2082_s20 + $0x10] sm:$0xff]  ;;  %v2120_v7 = vld [vmem:[%s2082_s20 + $0x18] sm:$0xff]  ;;  %s1346_s10 = sshll.u32 %s2287_s15, 4  ;;  %s1348_s7 = sshll.u32 %s1345_s13, 4  ;;  %s2551_s10 = int_to_ptr.vmem [resolvable:$true] %s1346_s10  ;;  %s1349_s7 = int_to_ptr.hbm [resolvable:$true] %s1348_s7 }
  0x36   : > { %v2123_v8 = vld [vmem:[%s2082_s20 + $0x60] sm:$0xff]  ;;  %v2129_v9 = vld [vmem:[%s2082_s20 + $0x68] sm:$0xff]  ;;  %v2141_v12 = vld [vmem:[%s2082_s20 + $0x70] sm:$0xff]  ;;  %s1329_s19 = scalar_lea.sflag [#allocation4], %s2078_s9 }
  0x37   : > { %v2132_v10 = vld [vmem:[%s2082_s20 + $0x20] sm:$0xff]  ;;  %v2135_v11 = vld [vmem:[%s2082_s20 + $0x28] sm:$0xff]  ;;  %v2144_v13 = vld [vmem:[%s2082_s20 + $0x78] sm:$0xff] }
  0x38   : > { %v2147_v14 = vld [vmem:[%s2082_s20 + $0x30] sm:$0xff]  ;;  %v2153_v15 = vld [vmem:[%s2082_s20 + $0x38] sm:$0xff]  ;;  %s1849_s20 = sshra.s32 %s1349_s7, 4  ;;  %s1850_s20 = int_to_ptr.hbm [resolvable:$true] %s1849_s20 }
  0x39   : > { %s1851_s27 = scalar_lea.hbm %s1850_s20, 64  ;;  %p1856_p11 = scmp.lt.s32.totalorder %s1850_s20, %s2657_s5 }
  0x3a   : > { %p1852_p1 = scmp.ne.s32.totalorder %s1850_s20, %s1851_s27 }
  0x3c   : > { %352 = vadd.xlane.f32.xlu0 %v2105_v3  ;;  %356 = vadd.xlane.f32.xlu2 %v2111_v5  ;;  %p1853_p4 = pnand %p1852_p1, %p2048_p3 }
  0x3d   : > { %336 = vadd.xlane.f32.xlu1 %v2108_v4 }
  0x3e   : > { %p1854_p8 = pneg %p1853_p4 }
  0x44   : > { %338 = vadd.xlane.f32.xlu0 %v2117_v6  ;;  %358 = vadd.xlane.f32.xlu2 %v2123_v8 }
  0x45   : > { %340 = vadd.xlane.f32.xlu1 %v2120_v7 }
  0x4c   : > { %360 = vadd.xlane.f32.xlu0 %v2129_v9  ;;  %344 = vadd.xlane.f32.xlu2 %v2135_v11 }
  0x4d   : > { %342 = vadd.xlane.f32.xlu1 %v2132_v10 }
  0x54   : > { %362 = vadd.xlane.f32.xlu0 %v2141_v12  ;;  %346 = vadd.xlane.f32.xlu2 %v2147_v14 }
  0x55   : > { %364 = vadd.xlane.f32.xlu1 %v2144_v13 }
  0x5c   : > { %348 = vadd.xlane.f32.xlu0 %v2153_v15 }
  0xa7   : > { %v351_v16 = vpop.xlane.xlu0 %350  ;;  %v355_v18 = vpop.xlane.xlu2 %354 }
  0xa8   : > { %v335_v17 = vpop.xlane.xlu1 %334 }
  0xaf   : > { %v353_v19 = vpop.xlane.xlu0 %352  ;;  %v357_v23 = vpop.xlane.xlu2 %356 }
  0xb0   : > { %v337_v20 = vpop.xlane.xlu1 %336  ;;  %v394_v21 = vadd.f32 %v353_v19, %v351_v16  ;;  %v401_v24 = vadd.f32 %v357_v23, %v355_v18 }
  0xb1   : > { %v366_v22 = vadd.f32 %v337_v20, %v335_v17 }
  0xb2   : > { %v395_v25 = vrot.slane %v394_v21, 4  ;;  %v402_v27 = vrot.slane %v401_v24, 4 }
  0xb3   : > { %v367_v26 = vrot.slane %v366_v22, 4 }
  0xb4   : > { %v396_v28 = vadd.f32 %v395_v25, %v394_v21  ;;  %v403_v30 = vadd.f32 %v402_v27, %v401_v24 }
  0xb5   : > { %v368_v29 = vadd.f32 %v367_v26, %v366_v22 }
  0xb6   : > { %v397_v31 = vrot.slane %v396_v28, 2  ;;  %v404_v33 = vrot.slane %v403_v30, 2 }
  0xb7   : > { %v369_v32 = vrot.slane %v368_v29, 2  ;;  %v339_v34 = vpop.xlane.xlu0 %338  ;;  %v359_v38 = vpop.xlane.xlu2 %358 }
  0xb8   : > { %v341_v35 = vpop.xlane.xlu1 %340  ;;  %v398_v36 = vadd.f32 %v397_v31, %v396_v28  ;;  %v405_v40 = vadd.f32 %v404_v33, %v403_v30 }
  0xb9   : > { %v370_v37 = vadd.f32 %v369_v32, %v368_v29  ;;  %v373_v39 = vadd.f32 %v341_v35, %v339_v34 }
  0xba   : > { %v399_v41 = vrot.slane %v398_v36, 1  ;;  %v406_v44 = vrot.slane %v405_v40, 1 }
  0xbb   : > { %v371_v42 = vrot.slane %v370_v37, 1  ;;  %v374_v43 = vrot.slane %v373_v39, 4 }
  0xbc   : > { %v400_v46 = vadd.f32 %v399_v41, %v398_v36  ;;  %v407_v48 = vadd.f32 %v406_v44, %v405_v40 }
  0xbd   : > { %v375_v45 = vadd.f32 %v374_v43, %v373_v39  ;;  %v372_v47 = vadd.f32 %v371_v42, %v370_v37 }
  0xbe   : > { %v426_v50 = vmul.f32 0.00048828125, %v400_v46  ;;  %v427_v61 = vmul.f32 0.00048828125, %v407_v48 }
  0xbf   : > { %v376_v49 = vrot.slane %v375_v45, 2  ;;  %v422_v51 = vmul.f32 0.00048828125, %v372_v47  ;;  %v361_v52 = vpop.xlane.xlu0 %360  ;;  %v345_v58 = vpop.xlane.xlu2 %344 }
  0xc0   : > { %v343_v53 = vpop.xlane.xlu1 %342  ;;  %v408_v54 = vadd.f32 %v361_v52, %v359_v38  ;;  %v2157_v56 = vsub.f32 %v2105_v3, %v426_v50  ;;  %v2160_v57 = vsub.f32 %v2093_v0, %v426_v50  ;;  %v2172_v21 = vsub.f32 %v2099_v2, %v427_v61 }
  0xc1   : > { %v377_v55 = vadd.f32 %v376_v49, %v375_v45  ;;  %v2163_v59 = vsub.f32 %v2096_v1, %v422_v51  ;;  %v380_v60 = vadd.f32 %v345_v58, %v343_v53  ;;  %v2175_v22 = vsub.f32 %v2108_v4, %v422_v51 }
  0xc2   : > { %v409_v62 = vrot.slane %v408_v54, 4  ;;  %v455_v16 = vmul.f32 %v2157_v56, %v2157_v56  ;;  %v454_v17 = vmul.f32 %v2160_v57, %v2160_v57  ;;  %v2178_v24 = vsub.f32 %v2111_v5, %v427_v61 }
  0xc3   : > { %v378_v63 = vrot.slane %v377_v55, 1  ;;  %v446_v3 = vmul.f32 %v2163_v59, %v2163_v59  ;;  %v381_v18 = vrot.slane %v380_v60, 4  ;;  %v456_v32 = vmul.f32 %v2172_v21, %v2172_v21 }
  0xc4   : > { %v410_v0 = vadd.f32 %v409_v62, %v408_v54  ;;  %480 = vadd.xlane.f32.xlu2 %v455_v16  ;;  %478 = vadd.xlane.f32.xlu1 %v454_v17  ;;  %v447_v2 = vmul.f32 %v2175_v22, %v2175_v22  ;;  %v457_v34 = vmul.f32 %v2178_v24, %v2178_v24 }
  0xc5   : > { %v379_v19 = vadd.f32 %v378_v63, %v377_v55  ;;  %462 = vadd.xlane.f32.xlu0 %v446_v3  ;;  %v382_v1 = vadd.f32 %v381_v18, %v380_v60 }
  0xc6   : > { %v411_v20 = vrot.slane %v410_v0, 2 }
  0xc7   : > { %v383_v23 = vrot.slane %v382_v1, 2  ;;  %v363_v25 = vpop.xlane.xlu0 %362  ;;  %v423_v27 = vmul.f32 0.00048828125, %v379_v19  ;;  %v347_v38 = vpop.xlane.xlu2 %346  ;;  %v1575_v19 = vld [vmem:[#allocation5 + $0x38] sm:$0xff] }
  0xc8   : > { %v365_v26 = vpop.xlane.xlu1 %364  ;;  %v412_v28 = vadd.f32 %v411_v20, %v410_v0  ;;  %1633 = vmatpush.bf16.msra.mxu2 %v1575_v19  ;;  %738 = vmatpush.bf16.msra.mxu0 %v1575_v19  ;;  %v1572_v20 = vld [vmem:[#allocation5 + $0x20] sm:$0xff] }
  0xc9   : > { %v415_v29 = vadd.f32 %v365_v26, %v363_v25  ;;  %v384_v30 = vadd.f32 %v383_v23, %v382_v1  ;;  %v2187_v5 = vsub.f32 %v2120_v7, %v423_v27  ;;  %v2190_v35 = vsub.f32 %v2117_v6, %v423_v27  ;;  %v1574_v1 = vld [vmem:[#allocation5 + $0x30] sm:$0xff]  ;;  %v1571_v23 = vld [vmem:[#allocation5 + $0x18] sm:$0xff] }
  0xca   : > { %v413_v31 = vrot.slane %v412_v28, 1 }
  0xcb   : > { %v416_v33 = vrot.slane %v415_v29, 4  ;;  %v385_v4 = vrot.slane %v384_v30, 1  ;;  %v449_v42 = vmul.f32 %v2187_v5, %v2187_v5  ;;  %v448_v43 = vmul.f32 %v2190_v35, %v2190_v35 }
  0xcc   : > { %482 = vadd.xlane.f32.xlu2 %v456_v32  ;;  %464 = vadd.xlane.f32.xlu1 %v447_v2  ;;  %v414_v37 = vadd.f32 %v413_v31, %v412_v28  ;;  %v1568_v32 = vld [vmem:[#allocation5] sm:$0xff] }
  0xcd   : > { %v417_v36 = vadd.f32 %v416_v33, %v415_v29  ;;  %484 = vadd.xlane.f32.xlu0 %v457_v34  ;;  %v386_v39 = vadd.f32 %v385_v4, %v384_v30  ;;  %1634 = vmatpush.bf16.msra.mxu2 %v1574_v1  ;;  %v1569_v29 = vld [vmem:[#allocation5 + $0x8] sm:$0xff] }
  0xce   : > { %v428_v41 = vmul.f32 0.00048828125, %v414_v37  ;;  %739 = vmatpush.bf16.msra.mxu0 %v1574_v1 }
  0xcf   : > { %v418_v40 = vrot.slane %v417_v36, 2  ;;  %v349_v7 = vpop.xlane.xlu0 %348  ;;  %v424_v46 = vmul.f32 0.00048828125, %v386_v39 }
  0xd0   : > { %v2197_v6 = vsub.f32 %v2123_v8, %v428_v41  ;;  %v387_v45 = vadd.f32 %v349_v7, %v347_v38  ;;  %v2202_v50 = vsub.f32 %v2129_v9, %v428_v41 }
  0xd1   : > { %v419_v44 = vadd.f32 %v418_v40, %v417_v36  ;;  %v2205_v52 = vsub.f32 %v2132_v10, %v424_v46  ;;  %v2208_v8 = vsub.f32 %v2135_v11, %v424_v46 }
  0xd2   : > { %v458_v48 = vmul.f32 %v2197_v6, %v2197_v6  ;;  %v388_v49 = vrot.slane %v387_v45, 4  ;;  %v459_v58 = vmul.f32 %v2202_v50, %v2202_v50 }
  0xd3   : > { %v420_v47 = vrot.slane %v419_v44, 1  ;;  %v450_v9 = vmul.f32 %v2205_v52, %v2205_v52  ;;  %v451_v61 = vmul.f32 %v2208_v8, %v2208_v8 }
  0xd4   : > { %468 = vadd.xlane.f32.xlu2 %v449_v42  ;;  %466 = vadd.xlane.f32.xlu1 %v448_v43  ;;  %v389_v51 = vadd.f32 %v388_v49, %v387_v45 }
  0xd5   : > { %v421_v53 = vadd.f32 %v420_v47, %v419_v44  ;;  %486 = vadd.xlane.f32.xlu0 %v458_v48 }
  0xd6   : > { %v390_v54 = vrot.slane %v389_v51, 2 }
  0xd7   : > { %v429_v60 = vmul.f32 0.00048828125, %v421_v53 }
  0xd8   : > { %v391_v55 = vadd.f32 %v390_v54, %v389_v51 }
  0xd9   : > { %v2217_v10 = vsub.f32 %v2144_v13, %v429_v60  ;;  %v2220_v11 = vsub.f32 %v2141_v12, %v429_v60 }
  0xda   : > { %v392_v62 = vrot.slane %v391_v55, 1 }
  0xdb   : > { %v461_v17 = vmul.f32 %v2217_v10, %v2217_v10  ;;  %v460_v3 = vmul.f32 %v2220_v11, %v2220_v11 }
  0xdc   : > { %488 = vadd.xlane.f32.xlu1 %v459_v58  ;;  %470 = vadd.xlane.f32.xlu2 %v450_v9  ;;  %v393_v63 = vadd.f32 %v392_v62, %v391_v55 }
  0xdd   : > { %472 = vadd.xlane.f32.xlu0 %v451_v61 }
  0xde   : > { %v425_v16 = vmul.f32 0.00048828125, %v393_v63 }
  0xe0   : > { %v2227_v18 = vsub.f32 %v2147_v14, %v425_v16  ;;  %v2232_v12 = vsub.f32 %v2153_v15, %v425_v16  ;;  %v1573_v14 = vld [vmem:[#allocation5 + $0x28] sm:$0xff]  ;;  %v1570_v15 = vld [vmem:[#allocation5 + $0x10] sm:$0xff] }
  0xe1   : > { %1635 = vmatpush.bf16.msra.mxu2 %v1573_v14  ;;  %740 = vmatpush.bf16.msra.mxu0 %v1573_v14 }
  0xe2   : > { %v452_v0 = vmul.f32 %v2227_v18, %v2227_v18  ;;  %v453_v13 = vmul.f32 %v2232_v12, %v2232_v12 }
  0xe4   : > { %492 = vadd.xlane.f32.xlu2 %v461_v17  ;;  %490 = vadd.xlane.f32.xlu1 %v460_v3 }
  0xe5   : > { %474 = vadd.xlane.f32.xlu0 %v452_v0  ;;  %1636 = vmatpush.bf16.msra.mxu2 %v1572_v20 }
  0xe6   : > { %741 = vmatpush.bf16.msra.mxu0 %v1572_v20 }
  0xe9   : > { %1637 = vmatpush.bf16.msra.mxu2 %v1571_v23 }
  0xea   : > { %742 = vmatpush.bf16.msra.mxu0 %v1571_v23 }
  0xec   : > { %476 = vadd.xlane.f32.xlu1 %v453_v13 }
  0xed   : > { %1638 = vmatpush.bf16.msra.mxu2 %v1570_v15 }
  0xee   : > { %743 = vmatpush.bf16.msra.mxu0 %v1570_v15 }
  0xf1   : > { %1639 = vmatpush.bf16.msra.mxu2 %v1569_v29 }
  0xf2   : > { %744 = vmatpush.bf16.msra.mxu0 %v1569_v29 }
  0xf5   : > { %1640 = vmatpush.bf16.msra.mxu2 %v1568_v32 }
  0xf6   : > { %745 = vmatpush.bf16.msra.mxu0 %v1568_v32 }
 0x137   : > { %v481_v25 = vpop.xlane.xlu2 %480  ;;  %v479_v26 = vpop.xlane.xlu1 %478 }
 0x138   : > { %v463_v27 = vpop.xlane.xlu0 %462  ;;  %v522_v28 = vadd.f32 %v481_v25, %v479_v26 }
 0x13a   : > { %v523_v30 = vrot.slane %v522_v28, 4 }
 0x13c   : > { %v524_v31 = vadd.f32 %v523_v30, %v522_v28 }
 0x13e   : > { %v525_v2 = vrot.slane %v524_v31, 2 }
 0x13f   : > { %v483_v33 = vpop.xlane.xlu2 %482  ;;  %v465_v4 = vpop.xlane.xlu1 %464 }
 0x140   : > { %v526_v34 = vadd.f32 %v525_v2, %v524_v31  ;;  %v485_v36 = vpop.xlane.xlu0 %484  ;;  %v494_v37 = vadd.f32 %v465_v4, %v463_v27 }
 0x141   : > { %v529_v38 = vadd.f32 %v485_v36, %v483_v33 }
 0x142   : > { %v527_v39 = vrot.slane %v526_v34, 1  ;;  %v495_v40 = vrot.slane %v494_v37, 4 }
 0x143   : > { %v530_v41 = vrot.slane %v529_v38, 4 }
 0x144   : > { %v528_v42 = vadd.f32 %v527_v39, %v526_v34  ;;  %v496_v43 = vadd.f32 %v495_v40, %v494_v37 }
 0x145   : > { %v531_v7 = vadd.f32 %v530_v41, %v529_v38 }
 0x146   : > { %v554_v44 = vmul.f32 0.00048828125, %v528_v42  ;;  %v497_v45 = vrot.slane %v496_v43, 2 }
 0x147   : > { %v532_v46 = vrot.slane %v531_v7, 2  ;;  %v469_v47 = vpop.xlane.xlu2 %468  ;;  %v467_v48 = vpop.xlane.xlu1 %466 }
 0x148   : > { %v562_v49 = vadd.f32 1e-05, %v554_v44  ;;  %v498_v51 = vadd.f32 %v497_v45, %v496_v43  ;;  %v487_v53 = vpop.xlane.xlu0 %486  ;;  %v501_v54 = vadd.f32 %v469_v47, %v467_v48 }
 0x149   : > { %v533_v55 = vadd.f32 %v532_v46, %v531_v7 }
 0x14a   : > { %1729 = vrsqrt.f32 %v562_v49  ;;  %v499_v58 = vrot.slane %v498_v51, 1  ;;  %v502_v9 = vrot.slane %v501_v54, 4  ;;  %vm612_vm1 = vweird.f32 %v562_v49 }
 0x14b   : > { %v534_v60 = vrot.slane %v533_v55, 1 }
 0x14c   : > { %v500_v61 = vadd.f32 %v499_v58, %v498_v51  ;;  %v503_v62 = vadd.f32 %v502_v9, %v501_v54 }
 0x14d   : > { %v535_v63 = vadd.f32 %v534_v60, %v533_v55 }
 0x14e   : > { %v550_v16 = vmul.f32 0.00048828125, %v500_v61  ;;  %v504_v17 = vrot.slane %v503_v62, 2 }
 0x14f   : > { %v555_v3 = vmul.f32 0.00048828125, %v535_v63  ;;  %v471_v0 = vpop.xlane.xlu2 %470  ;;  %v489_v13 = vpop.xlane.xlu1 %488 }
 0x150   : > { %v1730_v19 = vpop.eup %1729  ;;  %v2236_v1 = vadd.f32 1e-05, %v550_v16  ;;  %v505_v14 = vadd.f32 %v504_v17, %v503_v62  ;;  %v473_v20 = vpop.xlane.xlu0 %472  ;;  %v536_v23 = vadd.f32 %v489_v13, %v487_v53 }
 0x151   : > { %v607_v15 = vmul.f32 %v1730_v19, %v562_v49  ;;  %v2238_v25 = vadd.f32 1e-05, %v555_v3  ;;  %v508_v26 = vadd.f32 %v473_v20, %v471_v0  ;;  %vm613_vm0 = vweird.f32 %v1730_v19 }
 0x152   : > { %1731 = vrsqrt.f32 %v2236_v1  ;;  %v506_v27 = vrot.slane %v505_v14, 1  ;;  %v537_v28 = vrot.slane %v536_v23, 4  ;;  %vm614_vm2 = vmor %vm612_vm1, %vm613_vm0  ;;  %vm572_vm4 = vweird.f32 %v2236_v1 }
 0x153   : > { %1733 = vrsqrt.f32 %v2238_v25  ;;  %v509_v29 = vrot.slane %v508_v26, 4  ;;  %v608_v30 = vmul.f32 %v1730_v19, %v607_v15  ;;  %vm622_vm7 = vweird.f32 %v2238_v25 }
 0x154   : > { %v507_v31 = vadd.f32 %v506_v27, %v505_v14  ;;  %v538_v32 = vadd.f32 %v537_v28, %v536_v23 }
 0x155   : > { %v510_v2 = vadd.f32 %v509_v29, %v508_v26  ;;  %v609_v33 = vmul.f32 0.5, %v608_v30 }
 0x156   : > { %v551_v4 = vmul.f32 0.00048828125, %v507_v31  ;;  %v539_v34 = vrot.slane %v538_v32, 2 }
 0x157   : > { %v511_v36 = vrot.slane %v510_v2, 2  ;;  %v493_v37 = vpop.xlane.xlu2 %492  ;;  %v491_v38 = vpop.xlane.xlu1 %490  ;;  %v610_v39 = vsub.f32 1.5, %v609_v33 }
 0x158   : > { %v1732_v40 = vpop.eup %1731  ;;  %v2242_v41 = vadd.f32 1e-05, %v551_v4  ;;  %v540_v42 = vadd.f32 %v539_v34, %v538_v32  ;;  %v543_v43 = vadd.f32 %v493_v37, %v491_v38  ;;  %v475_v63 = vpop.xlane.xlu0 %474 }
 0x159   : > { %v1734_v7 = vpop.eup %1733  ;;  %v567_v44 = vmul.f32 %v1732_v40, %v2236_v1  ;;  %v512_v45 = vadd.f32 %v511_v36, %v510_v2  ;;  %v611_v46 = vmul.f32 %v1730_v19, %v610_v39  ;;  %vm573_vm3 = vweird.f32 %v1732_v40 }
 0x15a   : > { %v617_v47 = vmul.f32 %v1734_v7, %v2238_v25  ;;  %1735 = vrsqrt.f32 %v2242_v41  ;;  %v541_v48 = vrot.slane %v540_v42, 1  ;;  %v544_v51 = vrot.slane %v543_v43, 4  ;;  %vm574_vm5 = vmor %vm572_vm4, %vm573_vm3 }
 0x15b   : > { %v513_v53 = vrot.slane %v512_v45, 1  ;;  %v615_v54 = vsel %vm614_vm2, %v1730_v19, %v611_v46  ;;  %v568_v55 = vmul.f32 %v1732_v40, %v567_v44  ;;  %vm623_vm6 = vweird.f32 %v1734_v7 }
 0x15c   : > { %v542_v58 = vadd.f32 %v541_v48, %v540_v42  ;;  %v545_v9 = vadd.f32 %v544_v51, %v543_v43  ;;  %v654_v60 = vmul.f32 %v615_v54, %v2160_v57  ;;  %v655_v61 = vmul.f32 %v615_v54, %v2157_v56  ;;  %vm624_vm8 = vmor %vm622_vm7, %vm623_vm6 }
 0x15d   : > { %v514_v62 = vadd.f32 %v513_v53, %v512_v45  ;;  %v569_v16 = vmul.f32 0.5, %v568_v55  ;;  %v618_v49 = vmul.f32 %v1734_v7, %v617_v47  ;;  %vm582_vm10 = vweird.f32 %v2242_v41 }
 0x15e   : > { %v556_v17 = vmul.f32 0.00048828125, %v542_v58  ;;  %v546_v3 = vrot.slane %v545_v9, 2  ;;  %v666_v0 = vpack.c.bf16 %v655_v61, %v654_v60 }
 0x15f   : > { %v552_v13 = vmul.f32 0.00048828125, %v514_v62  ;;  %v477_v14 = vpop.xlane.xlu1 %476  ;;  %v570_v20 = vsub.f32 1.5, %v569_v16  ;;  %v619_v23 = vmul.f32 0.5, %v618_v49 }
 0x160   : > { %v1736_v19 = vpop.eup %1735  ;;  %v2249_v15 = vadd.f32 1e-05, %v556_v17  ;;  %v547_v26 = vadd.f32 %v546_v3, %v545_v9  ;;  %v515_v27 = vadd.f32 %v477_v14, %v475_v63  ;;  %766 = vmatmul.bf16.vlgmr.msra.gmra.mxu2 %v666_v0 }
 0x161   : > { %v577_v56 = vmul.f32 %v1736_v19, %v2242_v41  ;;  %v2253_v57 = vadd.f32 1e-05, %v552_v13  ;;  %v571_v28 = vmul.f32 %v1732_v40, %v570_v20  ;;  %v620_v29 = vsub.f32 1.5, %v619_v23  ;;  %v1583_v23 = vld [vmem:[#allocation7 + $0x38] sm:$0xff] }
 0x162   : > { %1737 = vrsqrt.f32 %v2249_v15  ;;  %v548_v30 = vrot.slane %v547_v26, 1  ;;  %v516_v31 = vrot.slane %v515_v27, 4  ;;  %vm583_vm9 = vweird.f32 %v1736_v19  ;;  %1641 = vmatpush.bf16.msra.mxu3 %v1583_v23  ;;  %891 = vmatpush.bf16.msra.mxu1 %v1583_v23 }
 0x163   : > { %1739 = vrsqrt.f32 %v2253_v57  ;;  %v575_v32 = vsel %vm574_vm5, %v1732_v40, %v571_v28  ;;  %v621_v2 = vmul.f32 %v1734_v7, %v620_v29  ;;  %v578_v33 = vmul.f32 %v1736_v19, %v577_v56  ;;  %vm584_vm11 = vmor %vm582_vm10, %vm583_vm9  ;;  %v1581_v28 = vld [vmem:[#allocation7 + $0x28] sm:$0xff] }
 0x164   : > { %v549_v4 = vadd.f32 %v548_v30, %v547_v26  ;;  %v517_v1 = vadd.f32 %v516_v31, %v515_v27  ;;  %v646_v34 = vmul.f32 %v575_v32, %v2163_v59  ;;  %v647_v36 = vmul.f32 %v575_v32, %v2175_v22  ;;  %v1580_v32 = vld [vmem:[#allocation7 + $0x20] sm:$0xff] }
 0x165   : > { %v579_v37 = vmul.f32 0.5, %v578_v33  ;;  %v625_v43 = vsel %vm624_vm8, %v1734_v7, %v621_v2  ;;  %vm632_vm13 = vweird.f32 %v2249_v15  ;;  %vm592_vm0 = vweird.f32 %v2253_v57 }
 0x166   : > { %v557_v38 = vmul.f32 0.00048828125, %v549_v4  ;;  %v518_v39 = vrot.slane %v517_v1, 2  ;;  %v662_v42 = vpack.c.bf16 %v647_v36, %v646_v34  ;;  %v656_v22 = vmul.f32 %v625_v43, %v2172_v21  ;;  %v1579_v4 = vld [vmem:[#allocation7 + $0x18] sm:$0xff] }
 0x167   : > { %v580_v44 = vsub.f32 1.5, %v579_v37  ;;  %v657_v25 = vmul.f32 %v625_v43, %v2178_v24 }
 0x168   : > { %v1738_v45 = vpop.eup %1737  ;;  %v2261_v46 = vadd.f32 1e-05, %v557_v38  ;;  %v519_v40 = vadd.f32 %v518_v39, %v517_v1  ;;  %746 = vmatmul.bf16.vlgmr.msra.gmra.mxu0 %v662_v42 }
 0x169   : > { %v1740_v47 = vpop.eup %1739  ;;  %v627_v48 = vmul.f32 %v1738_v45, %v2249_v15  ;;  %v581_v53 = vmul.f32 %v1736_v19, %v580_v44  ;;  %v667_v9 = vpack.c.bf16 %v657_v25, %v656_v22  ;;  %vm633_vm12 = vweird.f32 %v1738_v45  ;;  %v1578_v44 = vld [vmem:[#allocation7 + $0x10] sm:$0xff] }
 0x16a   : > { %1741 = vrsqrt.f32 %v2261_v46  ;;  %v520_v59 = vrot.slane %v519_v40, 1  ;;  %v587_v51 = vmul.f32 %v1740_v47, %v2253_v57  ;;  %vm634_vm14 = vmor %vm632_vm13, %vm633_vm12  ;;  %vm593_vm15 = vweird.f32 %v1740_v47 }
 0x16b   : > { %v628_v7 = vmul.f32 %v1738_v45, %v627_v48  ;;  %v585_v60 = vsel %vm584_vm11, %v1736_v19, %v581_v53  ;;  %vm594_vm1 = vmor %vm592_vm0, %vm593_vm15  ;;  %vm642_vm3 = vweird.f32 %v2261_v46 }
 0x16c   : > { %v521_v54 = vadd.f32 %v520_v59, %v519_v40  ;;  %v588_v62 = vmul.f32 %v1740_v47, %v587_v51  ;;  %v648_v21 = vmul.f32 %v585_v60, %v2190_v35  ;;  %v649_v24 = vmul.f32 %v585_v60, %v2187_v5  ;;  %v1582_v5 = vld [vmem:[#allocation7 + $0x30] sm:$0xff] }
 0x16d   : > { %v629_v55 = vmul.f32 0.5, %v628_v7  ;;  %1642 = vmatpush.bf16.msra.mxu3 %v1582_v5  ;;  %892 = vmatpush.bf16.msra.mxu1 %v1582_v5 }
 0x16e   : > { %v553_v58 = vmul.f32 0.00048828125, %v521_v54  ;;  %v589_v41 = vmul.f32 0.5, %v588_v62  ;;  %v663_v3 = vpack.c.bf16 %v649_v24, %v648_v21 }
 0x16f   : > { %v630_v61 = vsub.f32 1.5, %v629_v55 }
 0x170   : > { %v1742_v63 = vpop.eup %1741  ;;  %v561_v16 = vadd.f32 1e-05, %v553_v58  ;;  %771 = vmatmul.bf16.gmra.mxu2 %v667_v9  ;;  %v590_v13 = vsub.f32 1.5, %v589_v41 }
 0x171   : > { %v637_v49 = vmul.f32 %v1742_v63, %v2261_v46  ;;  %v631_v17 = vmul.f32 %v1738_v45, %v630_v61  ;;  %1643 = vmatpush.bf16.msra.mxu3 %v1581_v28  ;;  %893 = vmatpush.bf16.msra.mxu1 %v1581_v28  ;;  %vm643_vm2 = vweird.f32 %v1742_v63 }
 0x172   : > { %1743 = vrsqrt.f32 %v561_v16  ;;  %v591_v27 = vmul.f32 %v1740_v47, %v590_v13  ;;  %vm644_vm4 = vmor %vm642_vm3, %vm643_vm2  ;;  %vm602_vm6 = vweird.f32 %v561_v16 }
 0x173   : > { %v635_v0 = vsel %vm634_vm14, %v1738_v45, %v631_v17  ;;  %v638_v14 = vmul.f32 %v1742_v63, %v637_v49 }
 0x174   : > { %v658_v19 = vmul.f32 %v635_v0, %v2197_v6  ;;  %v659_v35 = vmul.f32 %v635_v0, %v2202_v50  ;;  %v595_v29 = vsel %vm594_vm1, %v1740_v47, %v591_v27 }
 0x175   : > { %v639_v56 = vmul.f32 0.5, %v638_v14  ;;  %v650_v6 = vmul.f32 %v595_v29, %v2205_v52  ;;  %v651_v50 = vmul.f32 %v595_v29, %v2208_v8  ;;  %1644 = vmatpush.bf16.msra.mxu3 %v1580_v32  ;;  %894 = vmatpush.bf16.msra.mxu1 %v1580_v32  ;;  %v1728_v29 = vld [vmem:[%s2656_s4] ss:$0 sm:$0xff] }
 0x176   : > { %v668_v15 = vpack.c.bf16 %v659_v35, %v658_v19 }
 0x177   : > { %v640_v30 = vsub.f32 1.5, %v639_v56  ;;  %v664_v57 = vpack.c.bf16 %v651_v50, %v650_v6 }
 0x178   : > { %v1744_v20 = vpop.eup %1743  ;;  %751 = vmatmul.bf16.gmra.mxu0 %v663_v3 }
 0x179   : > { %v597_v26 = vmul.f32 %v1744_v20, %v561_v16  ;;  %v641_v2 = vmul.f32 %v1742_v63, %v640_v30  ;;  %1645 = vmatpush.bf16.msra.mxu3 %v1579_v4  ;;  %895 = vmatpush.bf16.msra.mxu1 %v1579_v4  ;;  %vm603_vm5 = vweird.f32 %v1744_v20 }
 0x17a   : > { %vm604_vm7 = vmor %vm602_vm6, %vm603_vm5 }
 0x17b   : > { %v598_v31 = vmul.f32 %v1744_v20, %v597_v26  ;;  %v645_v1 = vsel %vm644_vm4, %v1742_v63, %v641_v2 }
 0x17c   : > { %v660_v52 = vmul.f32 %v645_v1, %v2220_v11  ;;  %v661_v8 = vmul.f32 %v645_v1, %v2217_v10  ;;  %v1577_v10 = vld [vmem:[#allocation7 + $0x8] sm:$0xff]  ;;  %v1576_v11 = vld [vmem:[#allocation7] sm:$0xff] }
 0x17d   : > { %v599_v33 = vmul.f32 0.5, %v598_v31  ;;  %1646 = vmatpush.bf16.msra.mxu3 %v1578_v44  ;;  %896 = vmatpush.bf16.msra.mxu1 %v1578_v44 }
 0x17e   : > { %v669_v37 = vpack.c.bf16 %v661_v8, %v660_v52 }
 0x17f   : > { %v600_v34 = vsub.f32 1.5, %v599_v33 }
 0x180   : > { %776 = vmatmul.bf16.gmra.mxu2 %v668_v15 }
 0x181   : > { %v601_v36 = vmul.f32 %v1744_v20, %v600_v34  ;;  %1647 = vmatpush.bf16.msra.mxu3 %v1577_v10  ;;  %897 = vmatpush.bf16.msra.mxu1 %v1577_v10 }
 0x183   : > { %v605_v38 = vsel %vm604_vm7, %v1744_v20, %v601_v36 }
 0x184   : > { %v652_v39 = vmul.f32 %v605_v38, %v2227_v18  ;;  %v653_v42 = vmul.f32 %v605_v38, %v2232_v12  ;;  %v1727_v18 = vld [vmem:[%s2654_s2] ss:$0 sm:$0xff] }
 0x185   : > { %1648 = vmatpush.bf16.msra.mxu3 %v1576_v11  ;;  %898 = vmatpush.bf16.msra.mxu1 %v1576_v11 }
 0x186   : > { %v665_v43 = vpack.c.bf16 %v653_v42, %v652_v39 }
 0x188   : > { %756 = vmatmul.bf16.gmra.mxu0 %v664_v57 }
 0x190   : > { %781 = vmatmul.bf16.gmra.mxu2 %v669_v37 }
 0x198   : > { %761 = vmatmul.bf16.gmra.mxu0 %v665_v43 }
 0x1e3   : > { %v767_v45 = vpop.f32.mrf.mxu2 }
 0x1e4   : > { %v768_v12 = vadd.f32 %v1727_v18, %v767_v45 }
 0x1e5   : > { %v747_v46 = vpop.f32.mrf.mxu0 }
 0x1e6   : > { %v748_v59 = vadd.f32 %v1727_v18, %v747_v46 }
 0x1eb   : > { %v769_v40 = vpop.f32.mrf.mxu2 }
 0x1ec   : > { %v770_v47 = vadd.f32 %v1727_v18, %v769_v40 }
 0x1ed   : > { %v749_v48 = vpop.f32.mrf.mxu0 }
 0x1ee   : > { %v750_v22 = vadd.f32 %v1727_v18, %v749_v48  ;;  %v1609_v25 = vpack.c.bf16 %v770_v47, %v768_v12 }
 0x1f0   : > { %1629 = vst [vmem:[%s2287_s15 + $0x20] sm:$0xff] %v1609_v25   ;;  %919 = vmatmul.bf16.vlgmr.msra.gmra.mxu3 %v1609_v25  ;;  %v1589_v51 = vpack.c.bf16 %v750_v22, %v748_v59 }
 0x1f2   : > { %1590 = vst [vmem:[%s2287_s15] sm:$0xff] %v1589_v51   ;;  %899 = vmatmul.bf16.vlgmr.msra.gmra.mxu1 %v1589_v51 }
 0x1f3   : > { %v772_v53 = vpop.f32.mrf.mxu2 }
 0x1f4   : > { %v773_v55 = vadd.f32 %v1727_v18, %v772_v53 }
 0x1f5   : > { %v752_v7 = vpop.f32.mrf.mxu0 }
 0x1f6   : > { %v753_v60 = vadd.f32 %v1727_v18, %v752_v7 }
 0x1fb   : > { %v774_v54 = vpop.f32.mrf.mxu2 }
 0x1fc   : > { %v775_v58 = vadd.f32 %v1727_v18, %v774_v54 }
 0x1fd   : > { %v754_v9 = vpop.f32.mrf.mxu0 }
 0x1fe   : > { %v755_v61 = vadd.f32 %v1727_v18, %v754_v9  ;;  %v1614_v62 = vpack.c.bf16 %v775_v58, %v773_v55 }
 0x200   : > { %1630 = vst [vmem:[%s2287_s15 + $0x28] sm:$0xff] %v1614_v62   ;;  %924 = vmatmul.bf16.gmra.mxu3 %v1614_v62  ;;  %v1594_v63 = vpack.c.bf16 %v755_v61, %v753_v60 }
 0x202   : > { %1626 = vst [vmem:[%s2287_s15 + $0x8] sm:$0xff] %v1594_v63   ;;  %904 = vmatmul.bf16.gmra.mxu1 %v1594_v63 }
 0x203   : > { %v777_v16 = vpop.f32.mrf.mxu2 }
 0x204   : > { %v778_v49 = vadd.f32 %v1727_v18, %v777_v16 }
 0x205   : > { %v757_v21 = vpop.f32.mrf.mxu0 }
 0x206   : > { %v758_v3 = vadd.f32 %v1727_v18, %v757_v21 }
 0x20b   : > { %v779_v24 = vpop.f32.mrf.mxu2 }
 0x20c   : > { %v780_v17 = vadd.f32 %v1727_v18, %v779_v24 }
 0x20d   : > { %v759_v41 = vpop.f32.mrf.mxu0 }
 0x20e   : > { %v760_v0 = vadd.f32 %v1727_v18, %v759_v41  ;;  %v1619_v13 = vpack.c.bf16 %v780_v17, %v778_v49  ;;  %v1008_v41 = vlaneseq }
 0x210   : > { %1631 = vst [vmem:[%s2287_s15 + $0x30] sm:$0xff] %v1619_v13   ;;  %929 = vmatmul.bf16.gmra.mxu3 %v1619_v13  ;;  %v1599_v14 = vpack.c.bf16 %v760_v0, %v758_v3  ;;  %v2348_v3 = vand.u32 127, %v1008_v41 }
 0x212   : > { %1627 = vst [vmem:[%s2287_s15 + $0x10] sm:$0xff] %v1599_v14   ;;  %909 = vmatmul.bf16.gmra.mxu1 %v1599_v14 }
 0x213   : > { %v782_v20 = vpop.f32.mrf.mxu2 }
 0x214   : > { %v783_v35 = vadd.f32 %v1727_v18, %v782_v20 }
 0x215   : > { %v762_v23 = vpop.f32.mrf.mxu0 }
 0x216   : > { %v763_v27 = vadd.f32 %v1727_v18, %v762_v23 }
 0x21b   : > { %v784_v19 = vpop.f32.mrf.mxu2 }
 0x21c   : > { %v785_v5 = vadd.f32 %v1727_v18, %v784_v19 }
 0x21d   : > { %v764_v26 = vpop.f32.mrf.mxu0 }
 0x21e   : > { %v765_v56 = vadd.f32 %v1727_v18, %v764_v26  ;;  %v1624_v15 = vpack.c.bf16 %v785_v5, %v783_v35 }
 0x220   : > { %1632 = vst [vmem:[%s2287_s15 + $0x38] sm:$0xff] %v1624_v15   ;;  %934 = vmatmul.bf16.gmra.mxu3 %v1624_v15  ;;  %v1604_v28 = vpack.c.bf16 %v765_v56, %v763_v27 }
 0x222   : > { %1628 = vst [vmem:[%s2287_s15 + $0x18] sm:$0xff] %v1604_v28   ;;  %914 = vmatmul.bf16.gmra.mxu1 %v1604_v28  ;;  %s1855_s15 = scalar_lea.hbm %s2657_s5, 128 }
 0x223   : > { %p1857_p2 = scmp.lt.s32.totalorder %s1855_s15, %s1851_s27 }
 0x225   : > { %p1858_p9 = por %p1857_p2, %p1856_p11 }
 0x227   : > { %p1859_p10 = pnand %p1858_p9, %p1854_p8 }
 0x26f   : > { %v900_v30 = vpop.f32.mrf.mxu1 }
 0x270   : > { %v941_v31 = vmul.f32 2.0, %v900_v30 }
 0x272   : > { %v2300_v6 = vsub.f32 %v1728_v29, %v941_v31 }
 0x273   : > { %v920_v50 = vpop.f32.mrf.mxu3 }
 0x274   : > { %v949_v32 = vmul.f32 2.0, %v920_v50  ;;  %976 = vmin.xlane.f32.xlu2 %v2300_v6 }
 0x276   : > { %v2303_v2 = vsub.f32 %v1728_v29, %v949_v32 }
 0x277   : > { %v902_v33 = vpop.f32.mrf.mxu1 }
 0x278   : > { %v942_v57 = vmul.f32 2.0, %v902_v33  ;;  %992 = vmin.xlane.f32.xlu1 %v2303_v2 }
 0x27a   : > { %v2306_v4 = vsub.f32 %v1728_v29, %v942_v57 }
 0x27b   : > { %v922_v1 = vpop.f32.mrf.mxu3 }
 0x27c   : > { %v950_v34 = vmul.f32 2.0, %v922_v1  ;;  %978 = vmin.xlane.f32.xlu0 %v2306_v4 }
 0x27e   : > { %v2309_v52 = vsub.f32 %v1728_v29, %v950_v34 }
 0x27f   : > { %v905_v8 = vpop.f32.mrf.mxu1 }
 0x280   : > { %v943_v36 = vmul.f32 2.0, %v905_v8  ;;  %994 = vmin.xlane.f32.xlu2 %v2309_v52 }
 0x282   : > { %v2312_v37 = vsub.f32 %v1728_v29, %v943_v36 }
 0x283   : > { %v925_v38 = vpop.f32.mrf.mxu3 }
 0x284   : > { %v951_v39 = vmul.f32 2.0, %v925_v38  ;;  %980 = vmin.xlane.f32.xlu1 %v2312_v37 }
 0x286   : > { %v2315_v42 = vsub.f32 %v1728_v29, %v951_v39 }
 0x287   : > { %v907_v43 = vpop.f32.mrf.mxu1 }
 0x288   : > { %v944_v44 = vmul.f32 2.0, %v907_v43  ;;  %996 = vmin.xlane.f32.xlu0 %v2315_v42 }
 0x28a   : > { %v2318_v10 = vsub.f32 %v1728_v29, %v944_v44 }
 0x28b   : > { %v927_v11 = vpop.f32.mrf.mxu3 }
 0x28c   : > { %982 = vmin.xlane.f32.xlu2 %v2318_v10  ;;  %v952_v22 = vmul.f32 2.0, %v927_v11 }
 0x28e   : > { %v2327_v53 = vsub.f32 %v1728_v29, %v952_v22 }
 0x28f   : > { %v910_v45 = vpop.f32.mrf.mxu1 }
 0x290   : > { %v945_v46 = vmul.f32 2.0, %v910_v45 }
 0x292   : > { %v2321_v18 = vsub.f32 %v1728_v29, %v945_v46 }
 0x293   : > { %v930_v40 = vpop.f32.mrf.mxu3 }
 0x294   : > { %984 = vmin.xlane.f32.xlu0 %v2321_v18  ;;  %v953_v55 = vmul.f32 2.0, %v930_v40 }
 0x296   : > { %v2335_v62 = vsub.f32 %v1728_v29, %v953_v55 }
 0x297   : > { %v912_v12 = vpop.f32.mrf.mxu1 }
 0x298   : > { %v946_v47 = vmul.f32 2.0, %v912_v12 }
 0x29a   : > { %v2324_v48 = vsub.f32 %v1728_v29, %v946_v47 }
 0x29b   : > { %v932_v59 = vpop.f32.mrf.mxu3 }
 0x29c   : > { %986 = vmin.xlane.f32.xlu1 %v2324_v48  ;;  %v954_v24 = vmul.f32 2.0, %v932_v59 }
 0x29e   : > { %v2344_v17 = vsub.f32 %v1728_v29, %v954_v24 }
 0x29f   : > { %v915_v25 = vpop.f32.mrf.mxu1 }
 0x2a0   : > { %v947_v51 = vmul.f32 2.0, %v915_v25 }
 0x2a2   : > { %v2329_v7 = vsub.f32 %v1728_v29, %v947_v51 }
 0x2a3   : > { %v935_v54 = vpop.f32.mrf.mxu3 }
 0x2a4   : > { %998 = vmin.xlane.f32.xlu1 %v2327_v53  ;;  %988 = vmin.xlane.f32.xlu2 %v2329_v7  ;;  %v955_v58 = vmul.f32 2.0, %v935_v54 }
 0x2a6   : > { %v2333_v61 = vsub.f32 %v1728_v29, %v955_v58 }
 0x2a7   : > { %v917_v9 = vpop.f32.mrf.mxu1 }
 0x2a8   : > { %v948_v60 = vmul.f32 2.0, %v917_v9 }
 0x2aa   : > { %v2337_v63 = vsub.f32 %v1728_v29, %v948_v60 }
 0x2ab   : > { %v937_v16 = vpop.f32.mrf.mxu3 }
 0x2ac   : > { %1004 = vmin.xlane.f32.xlu1 %v2333_v61  ;;  %1000 = vmin.xlane.f32.xlu2 %v2335_v62  ;;  %v956_v21 = vmul.f32 2.0, %v937_v16 }
 0x2ad   : > { %990 = vmin.xlane.f32.xlu0 %v2337_v63 }
 0x2ae   : > { %v2342_v49 = vsub.f32 %v1728_v29, %v956_v21 }
 0x2b4   : > { %1006 = vmin.xlane.f32.xlu2 %v2342_v49 }
 0x2b5   : > { %1002 = vmin.xlane.f32.xlu0 %v2344_v17 }
 0x2e7   : > { %v977_v0 = vpop.xlane.xlu2 %976 }
 0x2e8   : > { %vm1010_vm8 = vcmp.eq.f32.partialorder %v2300_v6, %v977_v0 }
 0x2e9   : > { %v2352_v13 = vsel %vm1010_vm8, %v2348_v3, 1073741824 }
 0x2ea   : > { %v1043_v14 = vshra.s32 %v2352_v13, 16 }
 0x2eb   : > { %v993_v20 = vpop.xlane.xlu1 %992 }
 0x2ec   : > { %vm1018_vm9 = vcmp.eq.f32.partialorder %v2303_v2, %v993_v20  ;;  %v2356_v23 = vcvt.s32.f32 %v1043_v14 }
 0x2ed   : > { %v2359_v19 = vsel %vm1018_vm9, %v2348_v3, 1073741824 }
 0x2ee   : > { %1046 = vmin.xlane.f32.xlu0 %v2356_v23  ;;  %v1155_v35 = vshra.s32 %v2359_v19, 16 }
 0x2ef   : > { %v979_v5 = vpop.xlane.xlu0 %978 }
 0x2f0   : > { %vm1011_vm10 = vcmp.eq.f32.partialorder %v2306_v4, %v979_v5  ;;  %v2364_v26 = vcvt.s32.f32 %v1155_v35  ;;  %v1154_v35 = vand.u32 65535, %v2359_v19 }
 0x2f1   : > { %v2367_v27 = vsel %vm1011_vm10, %v2348_v3, 1073741824 }
 0x2f2   : > { %1158 = vmin.xlane.f32.xlu2 %v2364_v26  ;;  %v1057_v56 = vshra.s32 %v2367_v27, 16 }
 0x2f3   : > { %v995_v15 = vpop.xlane.xlu2 %994 }
 0x2f4   : > { %vm1019_vm11 = vcmp.eq.f32.partialorder %v2309_v52, %v995_v15  ;;  %v2372_v28 = vcvt.s32.f32 %v1057_v56  ;;  %v1056_v15 = vand.u32 65535, %v2367_v27 }
 0x2f5   : > { %v2375_v29 = vsel %vm1019_vm11, %v2348_v3, 1073741824 }
 0x2f6   : > { %1060 = vmin.xlane.f32.xlu1 %v2372_v28  ;;  %v1169_v30 = vshra.s32 %v2375_v29, 16 }
 0x2f7   : > { %v981_v31 = vpop.xlane.xlu1 %980 }
 0x2f8   : > { %vm1012_vm12 = vcmp.eq.f32.partialorder %v2312_v37, %v981_v31  ;;  %v2380_v6 = vcvt.s32.f32 %v1169_v30  ;;  %v1156_v31 = vcvt.s32.f32 %v1154_v35 }
 0x2f9   : > { %v2383_v50 = vsel %vm1012_vm12, %v2348_v3, 1073741824 }
 0x2fa   : > { %1172 = vmin.xlane.f32.xlu0 %v2380_v6  ;;  %v1071_v32 = vshra.s32 %v2383_v50, 16  ;;  %v1070_v27 = vand.u32 65535, %v2383_v50 }
 0x2fb   : > { %v997_v2 = vpop.xlane.xlu0 %996 }
 0x2fc   : > { %vm1020_vm13 = vcmp.eq.f32.partialorder %v2315_v42, %v997_v2  ;;  %v2388_v33 = vcvt.s32.f32 %v1071_v32  ;;  %v1058_v2 = vcvt.s32.f32 %v1056_v15 }
 0x2fd   : > { %v2391_v57 = vsel %vm1020_vm13, %v2348_v3, 1073741824 }
 0x2fe   : > { %1074 = vmin.xlane.f32.xlu2 %v2388_v33  ;;  %v1183_v4 = vshra.s32 %v2391_v57, 16 }
 0x2ff   : > { %v983_v1 = vpop.xlane.xlu2 %982 }
 0x300   : > { %vm1013_vm14 = vcmp.eq.f32.partialorder %v2318_v10, %v983_v1  ;;  %v2396_v34 = vcvt.s32.f32 %v1183_v4 }
 0x301   : > { %v2399_v52 = vsel %vm1013_vm14, %v2348_v3, 1073741824 }
 0x302   : > { %1186 = vmin.xlane.f32.xlu1 %v2396_v34  ;;  %v1085_v8 = vshra.s32 %v2399_v52, 16  ;;  %v1084_v50 = vand.u32 65535, %v2399_v52 }
 0x304   : > { %v2403_v36 = vcvt.s32.f32 %v1085_v8 }
 0x306   : > { %1088 = vmin.xlane.f32.xlu0 %v2403_v36 }
 0x307   : > { %v985_v37 = vpop.xlane.xlu0 %984 }
 0x308   : > { %vm1014_vm15 = vcmp.eq.f32.partialorder %v2321_v18, %v985_v37  ;;  %v1072_v37 = vcvt.s32.f32 %v1070_v27 }
 0x309   : > { %v2408_v38 = vsel %vm1014_vm15, %v2348_v3, 1073741824 }
 0x30a   : > { %v1099_v39 = vshra.s32 %v2408_v38, 16 }
 0x30c   : > { %v2411_v42 = vcvt.s32.f32 %v1099_v39 }
 0x30e   : > { %1102 = vmin.xlane.f32.xlu1 %v2411_v42 }
 0x30f   : > { %v987_v43 = vpop.xlane.xlu1 %986 }
 0x310   : > { %vm1015_vm0 = vcmp.eq.f32.partialorder %v2324_v48, %v987_v43 }
 0x311   : > { %v2416_v44 = vsel %vm1015_vm0, %v2348_v3, 1073741824 }
 0x312   : > { %v1113_v10 = vshra.s32 %v2416_v44, 16 }
 0x314   : > { %v2419_v11 = vcvt.s32.f32 %v1113_v10 }
 0x316   : > { %1116 = vmin.xlane.f32.xlu2 %v2419_v11 }
 0x317   : > { %v989_v45 = vpop.xlane.xlu2 %988  ;;  %v999_v46 = vpop.xlane.xlu1 %998 }
 0x318   : > { %vm1016_vm1 = vcmp.eq.f32.partialorder %v2329_v7, %v989_v45  ;;  %vm1021_vm2 = vcmp.eq.f32.partialorder %v2327_v53, %v999_v46 }
 0x319   : > { %v2425_v18 = vsel %vm1016_vm1, %v2348_v3, 1073741824  ;;  %v2428_v40 = vsel %vm1021_vm2, %v2348_v3, 1073741824 }
 0x31a   : > { %v1127_v12 = vshra.s32 %v2425_v18, 16  ;;  %v1197_v47 = vshra.s32 %v2428_v40, 16 }
 0x31c   : > { %v2432_v48 = vcvt.s32.f32 %v1127_v12  ;;  %v2434_v59 = vcvt.s32.f32 %v1197_v47 }
 0x31e   : > { %1130 = vmin.xlane.f32.xlu0 %v2432_v48  ;;  %1200 = vmin.xlane.f32.xlu2 %v2434_v59 }
 0x31f   : > { %v1001_v22 = vpop.xlane.xlu2 %1000  ;;  %v1005_v25 = vpop.xlane.xlu1 %1004 }
 0x320   : > { %vm1022_vm3 = vcmp.eq.f32.partialorder %v2335_v62, %v1001_v22  ;;  %v991_v51 = vpop.xlane.xlu0 %990  ;;  %vm1024_vm4 = vcmp.eq.f32.partialorder %v2333_v61, %v1005_v25  ;;  %v1196_v25 = vand.u32 65535, %v2428_v40 }
 0x321   : > { %v2441_v53 = vsel %vm1022_vm3, %v2348_v3, 1073741824  ;;  %vm1017_vm5 = vcmp.eq.f32.partialorder %v2337_v63, %v991_v51  ;;  %v2445_v7 = vsel %vm1024_vm4, %v2348_v3, 1073741824 }
 0x322   : > { %v2448_v54 = vsel %vm1017_vm5, %v2348_v3, 1073741824  ;;  %v1211_v55 = vshra.s32 %v2441_v53, 16  ;;  %v1239_v9 = vshra.s32 %v2445_v7, 16  ;;  %v1238_v40 = vand.u32 65535, %v2445_v7 }
 0x323   : > { %v1141_v58 = vshra.s32 %v2448_v54, 16 }
 0x324   : > { %v2453_v60 = vcvt.s32.f32 %v1211_v55  ;;  %v2457_v62 = vcvt.s32.f32 %v1239_v9  ;;  %v1140_v9 = vand.u32 65535, %v2448_v54 }
 0x325   : > { %v2455_v61 = vcvt.s32.f32 %v1141_v58  ;;  %v1198_v58 = vcvt.s32.f32 %v1196_v25 }
 0x326   : > { %1214 = vmin.xlane.f32.xlu0 %v2453_v60  ;;  %1242 = vmin.xlane.f32.xlu2 %v2457_v62 }
 0x327   : > { %1144 = vmin.xlane.f32.xlu1 %v2455_v61  ;;  %v1007_v63 = vpop.xlane.xlu2 %1006 }
 0x328   : > { %vm1025_vm6 = vcmp.eq.f32.partialorder %v2342_v49, %v1007_v63  ;;  %v1003_v16 = vpop.xlane.xlu0 %1002  ;;  %v1042_v49 = vand.u32 65535, %v2352_v13  ;;  %v1168_v13 = vand.u32 65535, %v2375_v29  ;;  %v1182_v29 = vand.u32 65535, %v2391_v57 }
 0x329   : > { %v2464_v21 = vsel %vm1025_vm6, %v2348_v3, 1073741824  ;;  %vm1023_vm7 = vcmp.eq.f32.partialorder %v2344_v17, %v1003_v16  ;;  %v1086_v57 = vcvt.s32.f32 %v1084_v50 }
 0x32a   : > { %v2468_v24 = vsel %vm1023_vm7, %v2348_v3, 1073741824  ;;  %v1253_v41 = vshra.s32 %v2464_v21, 16  ;;  %v1044_v5 = vcvt.s32.f32 %v1042_v49  ;;  %v1170_v1 = vcvt.s32.f32 %v1168_v13 }
 0x32b   : > { %v1225_v0 = vshra.s32 %v2468_v24, 16  ;;  %v1184_v43 = vcvt.s32.f32 %v1182_v29  ;;  %v1252_v54 = vand.u32 65535, %v2464_v21  ;;  %v1224_v35 = vand.u32 65535, %v2468_v24 }
 0x32c   : > { %v2472_v14 = vcvt.s32.f32 %v1253_v41 }
 0x32d   : > { %v2474_v20 = vcvt.s32.f32 %v1225_v0  ;;  %v1226_v21 = vcvt.s32.f32 %v1224_v35 }
 0x32e   : > { %1256 = vmin.xlane.f32.xlu0 %v2472_v14 }
 0x32f   : > { %1228 = vmin.xlane.f32.xlu1 %v2474_v20 }
 0x361   : > { %v2480_v17 = vpop.xlane.xlu0 %1046 }
 0x362   : > { %vm1048_vm8 = vcmp.eq.f32.partialorder %v2356_v23, %v2480_v17 }
 0x363   : > { %v1049_v56 = vsel %vm1048_vm8, %v1044_v5, inf }
 0x364   : > { %1050 = vmin.xlane.f32.xlu1 %v1049_v56 }
 0x365   : > { %v2485_v30 = vpop.xlane.xlu2 %1158 }
 0x366   : > { %vm1160_vm9 = vcmp.eq.f32.partialorder %v2364_v26, %v2485_v30 }
 0x367   : > { %v1161_v32 = vsel %vm1160_vm9, %v1156_v31, inf }
 0x368   : > { %1162 = vmin.xlane.f32.xlu0 %v1161_v32 }
 0x369   : > { %v2490_v19 = vpop.xlane.xlu1 %1060 }
 0x36a   : > { %vm1062_vm10 = vcmp.eq.f32.partialorder %v2372_v28, %v2490_v19 }
 0x36b   : > { %v1063_v23 = vsel %vm1062_vm10, %v1058_v2, inf }
 0x36c   : > { %1064 = vmin.xlane.f32.xlu2 %v1063_v23 }
 0x36d   : > { %v2495_v4 = vpop.xlane.xlu0 %1172 }
 0x36e   : > { %vm1174_vm11 = vcmp.eq.f32.partialorder %v2380_v6, %v2495_v4 }
 0x36f   : > { %v1175_v26 = vsel %vm1174_vm11, %v1170_v1, inf }
 0x370   : > { %1176 = vmin.xlane.f32.xlu1 %v1175_v26 }
 0x371   : > { %v2500_v8 = vpop.xlane.xlu2 %1074 }
 0x372   : > { %vm1076_vm12 = vcmp.eq.f32.partialorder %v2388_v33, %v2500_v8  ;;  %v1098_v33 = vand.u32 65535, %v2408_v38  ;;  %v1126_v38 = vand.u32 65535, %v2425_v18  ;;  %v1210_v18 = vand.u32 65535, %v2441_v53 }
 0x373   : > { %v1077_v28 = vsel %vm1076_vm12, %v1072_v37, inf  ;;  %v1142_v53 = vcvt.s32.f32 %v1140_v9 }
 0x374   : > { %1078 = vmin.xlane.f32.xlu0 %v1077_v28  ;;  %v1100_v52 = vcvt.s32.f32 %v1098_v33  ;;  %v1212_v16 = vcvt.s32.f32 %v1210_v18 }
 0x375   : > { %v2505_v39 = vpop.xlane.xlu1 %1186 }
 0x376   : > { %vm1188_vm13 = vcmp.eq.f32.partialorder %v2396_v34, %v2505_v39  ;;  %v1112_v34 = vand.u32 65535, %v2416_v44 }
 0x377   : > { %v1189_v6 = vsel %vm1188_vm13, %v1184_v43, inf }
 0x378   : > { %1190 = vmin.xlane.f32.xlu2 %v1189_v6  ;;  %v1114_v22 = vcvt.s32.f32 %v1112_v34 }
 0x379   : > { %v2509_v10 = vpop.xlane.xlu0 %1088 }
 0x37a   : > { %vm1090_vm14 = vcmp.eq.f32.partialorder %v2403_v36, %v2509_v10 }
 0x37b   : > { %v1091_v45 = vsel %vm1090_vm14, %v1086_v57, inf }
 0x37c   : > { %1092 = vmin.xlane.f32.xlu1 %v1091_v45 }
 0x381   : > { %v2514_v46 = vpop.xlane.xlu1 %1102 }
 0x382   : > { %vm1104_vm15 = vcmp.eq.f32.partialorder %v2411_v42, %v2514_v46  ;;  %v1128_v42 = vcvt.s32.f32 %v1126_v38 }
 0x383   : > { %v1105_v12 = vsel %vm1104_vm15, %v1100_v52, inf }
 0x384   : > { %1106 = vmin.xlane.f32.xlu2 %v1105_v12 }
 0x389   : > { %v2519_v47 = vpop.xlane.xlu2 %1116 }
 0x38a   : > { %vm1118_vm0 = vcmp.eq.f32.partialorder %v2419_v11, %v2519_v47 }
 0x38b   : > { %v1119_v36 = vsel %vm1118_vm0, %v1114_v22, inf }
 0x38c   : > { %1120 = vmin.xlane.f32.xlu0 %v1119_v36 }
 0x391   : > { %v2525_v51 = vpop.xlane.xlu0 %1130  ;;  %v2527_v55 = vpop.xlane.xlu2 %1200 }
 0x392   : > { %vm1132_vm1 = vcmp.eq.f32.partialorder %v2432_v48, %v2525_v51  ;;  %vm1202_vm2 = vcmp.eq.f32.partialorder %v2434_v59, %v2527_v55  ;;  %v1240_v59 = vcvt.s32.f32 %v1238_v40 }
 0x393   : > { %v1133_v44 = vsel %vm1132_vm1, %v1128_v42, inf  ;;  %v1203_v11 = vsel %vm1202_vm2, %v1198_v58, inf }
 0x394   : > { %1134 = vmin.xlane.f32.xlu1 %v1133_v44  ;;  %1204 = vmin.xlane.f32.xlu0 %v1203_v11 }
 0x399   : > { %v2536_v63 = vpop.xlane.xlu0 %1214  ;;  %v2538_v41 = vpop.xlane.xlu2 %1242 }
 0x39a   : > { %v2540_v48 = vpop.xlane.xlu1 %1144  ;;  %vm1216_vm3 = vcmp.eq.f32.partialorder %v2453_v60, %v2536_v63  ;;  %vm1244_vm4 = vcmp.eq.f32.partialorder %v2457_v62, %v2538_v41  ;;  %v1254_v62 = vcvt.s32.f32 %v1252_v54 }
 0x39b   : > { %v1217_v0 = vsel %vm1216_vm3, %v1212_v16, inf  ;;  %v1245_v7 = vsel %vm1244_vm4, %v1240_v59, inf  ;;  %vm1146_vm5 = vcmp.eq.f32.partialorder %v2455_v61, %v2540_v48 }
 0x39c   : > { %1218 = vmin.xlane.f32.xlu1 %v1217_v0  ;;  %1246 = vmin.xlane.f32.xlu0 %v1245_v7  ;;  %v1147_v49 = vsel %vm1146_vm5, %v1142_v53, inf }
 0x39d   : > { %1148 = vmin.xlane.f32.xlu2 %v1147_v49 }
 0x3a1   : > { %v2554_v60 = vpop.xlane.xlu0 %1256 }
 0x3a2   : > { %v2559_v61 = vpop.xlane.xlu1 %1228  ;;  %vm1258_vm6 = vcmp.eq.f32.partialorder %v2472_v14, %v2554_v60 }
 0x3a3   : > { %v1259_v24 = vsel %vm1258_vm6, %v1254_v62, inf  ;;  %vm1230_vm7 = vcmp.eq.f32.partialorder %v2474_v20, %v2559_v61 }
 0x3a4   : > { %1260 = vmin.xlane.f32.xlu1 %v1259_v24  ;;  %v1231_v5 = vsel %vm1230_vm7, %v1226_v21, inf }
 0x3a5   : > { %1862 = shalt.err (!%p1859_p10)
}
 0x3a6   : > { %s1945_s11 = smov 64   ;;  %s1946_s12 = smov 4   ;;  %1232 = vmin.xlane.f32.xlu2 %v1231_v5  ;;  %v1053_v20 = vcvt.f32.s32 %v2480_v17  ;;  %v1067_v56 = vcvt.f32.s32 %v2490_v19  ;;  %v1267_v27 = vadd.s32 4294967288, %v2348_v3  ;;  %vm1269_vm8 = vcmask 130112  }
 0x3a7   : > { %1659 = dma.vmem_to_hbm [thread:$0]  (%p2048_p3), %s2551_s10, 1024, %s1349_s7, %s1329_s19, %s1945_s11, %s1945_s11, %s1946_s12   ;;  %v1081_v29 = vcvt.f32.s32 %v2500_v8  ;;  %v1271_v6 = vadd.s32 4294967280, %v2348_v3  ;;  %vm1273_vm9 = vcmask 195712   ;;  %v1095_v33 = vcvt.f32.s32 %v2509_v10 }
 0x3a8   : > { %v1054_v31 = vshll.u32 %v1053_v20, 16  ;;  %v1068_v2 = vshll.u32 %v1067_v56, 16  ;;  %v1275_v36 = vadd.s32 4294967272, %v2348_v3  ;;  %vm1277_vm10 = vcmask 261312   ;;  %s1360_s13 = scalar_lea.hbm %s2658_s6, %s2003_s25  ;;  %s315_s7 = scalar_lea.vmem [#allocation9], %s2078_s9 }
 0x3a9   : > { %v1082_v43 = vshll.u32 %v1081_v29, 16  ;;  %v1096_v22 = vshll.u32 %v1095_v33, 16  ;;  %v1109_v42 = vcvt.f32.s32 %v2514_v46  ;;  %v1279_v40 = vadd.s32 4294967264, %v2348_v3  ;;  %s1362_s19 = sshll.u32 %s315_s7, 4  ;;  %s1364_s20 = sshll.u32 %s1360_s13, 4  ;;  %s1363_s19 = int_to_ptr.vmem [resolvable:$true] %s1362_s19  ;;  %s1365_s20 = int_to_ptr.hbm [resolvable:$true] %s1364_s20 }
 0x3aa   : > { %vm1281_vm11 = vcmask 326912   ;;  %v1123_v16 = vcvt.f32.s32 %v2519_v47  ;;  %v1283_v54 = vadd.s32 4294967256, %v2348_v3  ;;  %vm1285_vm12 = vcmask 392512   ;;  %s1334_s25 = scalar_lea.sflag [#allocation10], %s2078_s9  ;;  %s1877_s27 = sshra.s32 %s1365_s20, 4  ;;  %s1878_s27 = int_to_ptr.hbm [resolvable:$true] %s1877_s27 }
 0x3ab   : > { %v1110_v18 = vshll.u32 %v1109_v42, 16  ;;  %v1137_v46 = vcvt.f32.s32 %v2525_v51  ;;  %vm1289_vm13 = vcmask 458112   ;;  %v1221_v29 = vcvt.f32.s32 %v2536_v63  ;;  %s1879_s8 = scalar_lea.hbm %s1878_s27, 1  ;;  %s1883_s16 = scalar_lea.hbm %s2658_s6, 2 }
 0x3ac   : > { %v1124_v7 = vshll.u32 %v1123_v16, 16  ;;  %vm1293_vm14 = vcmask 523712   ;;  %v1307_v42 = vadd.s32 4294967208, %v2348_v3  ;;  %vm1297_vm15 = vcmask 589312   ;;  %p1880_p12 = scmp.ne.s32.totalorder %s1878_s27, %s1879_s8  ;;  %p1884_p5 = scmp.lt.s32.totalorder %s1878_s27, %s2658_s6 }
 0x3ad   : > { %v1138_v5 = vshll.u32 %v1137_v46, 16  ;;  %vm1301_vm0 = vcmask 654912   ;;  %vm1305_vm1 = vcmask 720512   ;;  %vm1309_vm2 = vcmask 786112   ;;  %p1885_p7 = scmp.lt.s32.totalorder %s1883_s16, %s1879_s8 }
 0x3ae   : > { %vm1313_vm3 = vcmask 851712   ;;  %vm1317_vm4 = vcmask 917312   ;;  %vm1321_vm5 = vcmask 982912   ;;  %vm1325_vm6 = vcmask 1048512   ;;  %p1881_p13 = pnand %p1880_p12, %p2048_p3 }
 0x3af   : > { %p1886_p1 = por %p1885_p7, %p1884_p5 }
 0x3b0   : > { %p1882_p0 = pneg %p1881_p13 }
 0x3b2   : > { %p1887_p4 = pnand %p1886_p1, %p1882_p0 }
 0x3d7   : > { %v1051_v14 = vpop.xlane.xlu1 %1050 }
 0x3d8   : > { %v1052_v15 = vcvt.f32.s32 %v1051_v14  ;;  %v1287_v14 = vadd.s32 4294967248, %v2348_v3 }
 0x3da   : > { %v1055_v23 = vadd.s32 %v1054_v31, %v1052_v15  ;;  %v1165_v15 = vcvt.f32.s32 %v2485_v30  ;;  %v1179_v31 = vcvt.f32.s32 %v2495_v4  ;;  %v1263_v30 = vcvt.f32.s32 %v2554_v60 }
 0x3db   : > { %v2579_v32 = vpop.xlane.xlu0 %1162  ;;  %v1222_v60 = vshll.u32 %v1221_v29, 16 }
 0x3dc   : > { %v1266_v37 = vperm.slane %v1055_v23, %v2348_v3  ;;  %v1207_v23 = vcvt.f32.s32 %v2527_v55  ;;  %v1164_v51 = vcvt.f32.s32 %v2579_v32  ;;  %v1295_v32 = vadd.s32 4294967232, %v2348_v3 }
 0x3de   : > { %v1208_v55 = vshll.u32 %v1207_v23, 16 }
 0x3df   : > { %v1065_v13 = vpop.xlane.xlu2 %1064 }
 0x3e0   : > { %v1066_v1 = vcvt.f32.s32 %v1065_v13  ;;  %v1193_v13 = vcvt.f32.s32 %v2505_v39  ;;  %v1235_v39 = vcvt.f32.s32 %v2559_v61  ;;  %v1299_v61 = vadd.s32 4294967224, %v2348_v3 }
 0x3e2   : > { %v1069_v26 = vadd.s32 %v1068_v2, %v1066_v1  ;;  %v1194_v4 = vshll.u32 %v1193_v13, 16 }
 0x3e3   : > { %v2584_v50 = vpop.xlane.xlu1 %1176 }
 0x3e4   : > { %v1268_v28 = vperm.slane %v1069_v26, %v1267_v27  ;;  %v1151_v27 = vcvt.f32.s32 %v2540_v48  ;;  %v1166_v26 = vshll.u32 %v1165_v15, 16 }
 0x3e6   : > { %v1270_v17 = vsel %vm1269_vm8, %v1268_v28, %v1266_v37  ;;  %v1249_v37 = vcvt.f32.s32 %v2538_v41  ;;  %v1291_v41 = vadd.s32 4294967240, %v2348_v3 }
 0x3e7   : > { %v1079_v19 = vpop.xlane.xlu0 %1078 }
 0x3e8   : > { %v1080_v57 = vcvt.f32.s32 %v1079_v19  ;;  %v1178_v19 = vcvt.f32.s32 %v2584_v50  ;;  %v1250_v33 = vshll.u32 %v1249_v37, 16 }
 0x3ea   : > { %v1083_v45 = vadd.s32 %v1082_v43, %v1080_v57  ;;  %v1167_v43 = vadd.s32 %v1166_v26, %v1164_v51  ;;  %v1152_v57 = vshll.u32 %v1151_v27, 16 }
 0x3eb   : > { %v2588_v34 = vpop.xlane.xlu2 %1190 }
 0x3ec   : > { %v1272_v52 = vperm.slane %v1083_v45, %v1271_v6  ;;  %v1192_v48 = vcvt.f32.s32 %v2588_v34 }
 0x3ee   : > { %v1274_v12 = vsel %vm1273_vm9, %v1272_v52, %v1270_v17  ;;  %v1180_v17 = vshll.u32 %v1179_v31, 16  ;;  %v1264_v52 = vshll.u32 %v1263_v30, 16  ;;  %v1195_v34 = vadd.s32 %v1194_v4, %v1192_v48 }
 0x3ef   : > { %v1093_v8 = vpop.xlane.xlu1 %1092 }
 0x3f0   : > { %v1094_v38 = vcvt.f32.s32 %v1093_v8  ;;  %v1236_v8 = vshll.u32 %v1235_v39, 16  ;;  %v1181_v50 = vadd.s32 %v1180_v17, %v1178_v19 }
 0x3f2   : > { %v1097_v25 = vadd.s32 %v1096_v22, %v1094_v38  ;;  %v1296_v38 = vperm.slane %v1167_v43, %v1295_v32 }
 0x3f4   : > { %v1276_v58 = vperm.slane %v1097_v25, %v1275_v36  ;;  %v1303_v25 = vadd.s32 4294967216, %v2348_v3 }
 0x3f6   : > { %v1278_v44 = vsel %vm1277_vm10, %v1276_v58, %v1274_v12 }
 0x3f7   : > { %v1107_v11 = vpop.xlane.xlu2 %1106 }
 0x3f8   : > { %v1108_v10 = vcvt.f32.s32 %v1107_v11 }
 0x3fa   : > { %v1111_v9 = vadd.s32 %v1110_v18, %v1108_v10  ;;  %v1311_v18 = vadd.s32 4294967200, %v2348_v3 }
 0x3fc   : > { %v1280_v59 = vperm.slane %v1111_v9, %v1279_v40  ;;  %v1300_v9 = vperm.slane %v1181_v50, %v1299_v61 }
 0x3fe   : > { %v1282_v0 = vsel %vm1281_vm11, %v1280_v59, %v1278_v44 }
 0x3ff   : > { %v1121_v53 = vpop.xlane.xlu0 %1120 }
 0x400   : > { %v1122_v49 = vcvt.f32.s32 %v1121_v53 }
 0x402   : > { %v1125_v35 = vadd.s32 %v1124_v7, %v1122_v49 }
 0x404   : > { %v1284_v62 = vperm.slane %v1125_v35, %v1283_v54  ;;  %v1315_v35 = vadd.s32 4294967192, %v2348_v3 }
 0x406   : > { %v1286_v21 = vsel %vm1285_vm12, %v1284_v62, %v1282_v0  ;;  %v1304_v0 = vperm.slane %v1195_v34, %v1303_v25  ;;  %v1319_v62 = vadd.s32 4294967184, %v2348_v3 }
 0x407   : > { %v1135_v24 = vpop.xlane.xlu1 %1134  ;;  %v1205_v56 = vpop.xlane.xlu0 %1204 }
 0x408   : > { %v1136_v20 = vcvt.f32.s32 %v1135_v24  ;;  %v1206_v63 = vcvt.f32.s32 %v1205_v56  ;;  %v1323_v56 = vadd.s32 4294967176, %v2348_v3 }
 0x40a   : > { %v1139_v47 = vadd.s32 %v1138_v5, %v1136_v20  ;;  %v1209_v58 = vadd.s32 %v1208_v55, %v1206_v63 }
 0x40c   : > { %v1288_v2 = vperm.slane %v1139_v47, %v1287_v14  ;;  %v1308_v54 = vperm.slane %v1209_v58, %v1307_v42 }
 0x40e   : > { %v1290_v1 = vsel %vm1289_vm13, %v1288_v2, %v1286_v21 }
 0x40f   : > { %v1219_v28 = vpop.xlane.xlu1 %1218  ;;  %v1247_v22 = vpop.xlane.xlu0 %1246 }
 0x410   : > { %v1149_v6 = vpop.xlane.xlu2 %1148  ;;  %v1220_v12 = vcvt.f32.s32 %v1219_v28  ;;  %v1248_v11 = vcvt.f32.s32 %v1247_v22 }
 0x411   : > { %v1150_v45 = vcvt.f32.s32 %v1149_v6 }
 0x412   : > { %v1223_v40 = vadd.s32 %v1222_v60, %v1220_v12  ;;  %v1251_v21 = vadd.s32 %v1250_v33, %v1248_v11 }
 0x413   : > { %v1153_v36 = vadd.s32 %v1152_v57, %v1150_v45 }
 0x414   : > { %v1312_v5 = vperm.slane %v1223_v40, %v1311_v18  ;;  %v1320_v13 = vperm.slane %v1251_v21, %v1319_v62 }
 0x415   : > { %v1292_v44 = vperm.slane %v1153_v36, %v1291_v41 }
 0x417   : > { %v1261_v10 = vpop.xlane.xlu1 %1260  ;;  %v1294_v16 = vsel %vm1293_vm14, %v1292_v44, %v1290_v1 }
 0x418   : > { %v1262_v59 = vcvt.f32.s32 %v1261_v10  ;;  %v1298_v53 = vsel %vm1297_vm15, %v1296_v38, %v1294_v16 }
 0x419   : > { %v1233_v7 = vpop.xlane.xlu2 %1232  ;;  %v1302_v49 = vsel %vm1301_vm0, %v1300_v9, %v1298_v53 }
 0x41a   : > { %v1234_v46 = vcvt.f32.s32 %v1233_v7  ;;  %v1306_v24 = vsel %vm1305_vm1, %v1304_v0, %v1302_v49  ;;  %v1265_v47 = vadd.s32 %v1264_v52, %v1262_v59 }
 0x41b   : > { %v1310_v14 = vsel %vm1309_vm2, %v1308_v54, %v1306_v24 }
 0x41c   : > { %v1237_v20 = vadd.s32 %v1236_v8, %v1234_v46  ;;  %v1314_v15 = vsel %vm1313_vm3, %v1312_v5, %v1310_v14  ;;  %v1324_v23 = vperm.slane %v1265_v47, %v1323_v56 }
 0x41e   : > { %v1316_v31 = vperm.slane %v1237_v20, %v1315_v35 }
 0x420   : > { %v1318_v2 = vsel %vm1317_vm4, %v1316_v31, %v1314_v15 }
 0x421   : > { %v1322_v51 = vsel %vm1321_vm5, %v1320_v13, %v1318_v2 }
 0x422   : > { %v1326_v27 = vsel %vm1325_vm6, %v1324_v23, %v1322_v51 }
 0x423   : > { %1327 = vst [vmem:[%s315_s7] sm:$0x1] %v1326_v27 }
 0x424   : > { %1890 = shalt.err (!%p1887_p4)
}
 0x425   : > { %1660 = dma.vmem_to_hbm [thread:$0]  (%p2048_p3), %s1363_s19, 16, %s1365_s20, %s1334_s25  }
 0x426 PF: > { %s1376_s9 = sand.u32 1, %s1925_s21   ;;  %p2664_p8 = scmp.ge.s32.totalorder %s1937_s24, 2 }
 0x427   : > { %s1377_s12 = scalar_lea.sflag [#allocation4], %s1376_s9 }
 0x428   : > { %p1675_p11 = pnand %p2664_p8, %p2017_p6 }
 0x42a   : > { %p1676_p2 = pneg %p1675_p11 }
 0x42c   : > { %1916 = dma.done.wait (%p1676_p2), %s1377_s12, 1024  }
 0x42d   : > { %1918 = vsyncadd (%p1676_p2), %s1377_s12, 4294966272  ;;  %s1387_s10 = scalar_lea.sflag [#allocation10], %s1376_s9 }
 0x42e   : > { %1920 = dma.done.wait (%p1676_p2), %s1387_s10, 16  }
 0x42f   : > { %1922 = vsyncadd (%p1676_p2), %s1387_s10, 4294967280  ;;  %p24_p3 = scmp.ge.s32.totalorder %s2038_s18, 4   ;;  %s2665_s21 = smov %s1929_s22 }
 0x430   : > { %s2666_s22 = smov %s1933_s23  ;;  %s2667_s23 = smov %s2054_s29 }
 0x431   : > { %s2668_s24 = smov %s2038_s18  ;;  %26 = sbr.rel (!%p24_p3) target bundleno = 8 (0x8), region = 110 }
 0x436   :  { %1392 = vsyncpa [#allocation3], 1 }
 0x437   :  { %1394 = vsyncpa [#allocation3 + $0x1], 1 }
 0x438   :  { %1395 = vsyncpa [#allocation6], 1 }
 0x439   :  { %1396 = vsyncpa [#allocation4], 1 }
 0x43a   :  { %1398 = vsyncpa [#allocation4 + $0x1], 1 }
 0x43b   :  { %1399 = vsyncpa [#allocation10], 1 }
 0x43c   :  { %1401 = vsyncpa [#allocation10 + $0x1], 1 }

</bundles_post_ra>
